<compile_context>
chip_gen: v5e
topology: v5e:2x2
jax: 0.10.0
libtpu: 0.0.40
codegen_flags: <defaults>
</compile_context>

<pallas_src>
import functools

import jax
import jax.numpy as jnp
from jax.experimental import pallas as pl
from jax.experimental.pallas import tpu as pltpu

_LANE = 128


def _round_up(x, m):
    return ((x + m - 1) // m) * m


def _choose_k_block(k_pad, max_lanes):
    """Smallest block count nk s.t. k_pad/nk is a multiple of 128 lanes and at
    most max_lanes.  Returns (k_block, nk)."""
    m = k_pad // _LANE
    max_m = max(1, max_lanes // _LANE)
    nk = 1
    while (m % nk) or (m // nk) > max_m:
        nk += 1
    return (m // nk) * _LANE, nk


# ---------------------------------------------------------------------------
# Kernels
# ---------------------------------------------------------------------------


def _gather_kernel_2d(joint_ref, idx_ref, out_ref, *, k_max):
    # joint_ref: (TILE_N, K_pad) f32 -- full flattened row, resident in VMEM
    # idx_ref / out_ref: (TILE_N, TILE_B)
    idx = jnp.clip(idx_ref[...], 0, k_max)
    out_ref[...] = jnp.take_along_axis(joint_ref[...], idx, axis=-1)


def _gather_kernel_3d(joint_ref, idx_ref, out_ref, *, k_block):
    # K blocked over the innermost ("arbitrary") grid axis; the output tile is
    # resident across it and exactly one K block contributes per element.
    k = pl.program_id(2)

    @pl.when(k == 0)
    def _():
        out_ref[...] = jnp.zeros_like(out_ref)

    local = idx_ref[...] - k * k_block
    valid = (local >= 0) & (local < k_block)
    safe = jnp.clip(local, 0, k_block - 1)
    g = jnp.take_along_axis(joint_ref[...], safe, axis=-1)
    out_ref[...] += jnp.where(valid, g, jnp.float32(0.0))


def _onehot_kernel_3d(joint_ref, idx_ref, out_ref, *, k_block, lane_chunk):
    # Fallback (only if Mosaic rejects the gather lowering): one-hot
    # compare/select/lane-reduce in lane_chunk-wide pieces over small tiles.
    k = pl.program_id(2)

    @pl.when(k == 0)
    def _():
        out_ref[...] = jnp.zeros_like(out_ref)

    idx = idx_ref[...]
    base = k * k_block
    num_chunks = k_block // lane_chunk
    # Hoisted once: JAX does not CSE broadcast_in_dim.
    lane_iota = jax.lax.broadcasted_iota(jnp.int32, (1, 1, lane_chunk), 2)

    def body(ci, acc):
        start = pl.multiple_of(ci * lane_chunk, lane_chunk)
        chunk = joint_ref[:, pl.ds(start, lane_chunk)]              # (TN, LC)
        mask = idx[:, :, None] == (lane_iota + (base + start))      # (TN,TB,LC)
        sel = jnp.where(mask, chunk[:, None, :], jnp.float32(0.0))
        return acc + jnp.sum(sel, axis=-1)

    acc = jax.lax.fori_loop(0, num_chunks, body,
                            jnp.zeros(idx.shape, jnp.float32),
                            unroll=min(num_chunks, 4))
    out_ref[...] += acc


# ---------------------------------------------------------------------------
# Wrapper
# ---------------------------------------------------------------------------


class JointForward:
    """Pallas TPU implementation of JointModule.forward:
        out[i, j] = joint[i, a[i, j], b[i, j], c[i, j]]   -> (n, batch)

    The flattened / padded joint table is precomputed once at construction
    (joint is a Parameter); the per-call path only builds the flat index
    stream, pads it and runs the kernel.
    """

    _MAX_TILE_N = 64
    _JOINT_BLOCK_BUDGET = 4 << 20   # bytes for a double-buffered joint block

    def __init__(self, joint, *, max_k_block=4096):
        joint = jnp.asarray(joint, jnp.float32)
        n, A, B, C = joint.shape
        K = A * B * C
        assert K < 2**31, "flattened joint index would overflow int32"
        self.n, self.A, self.B, self.C, self.K = n, A, B, C, K

        self.K_pad = _round_up(K, _LANE)
        # Block K onto a third grid axis only when the flattened row is large.
        self.k_block, self.nk = _choose_k_block(self.K_pad, max_k_block)

        # TILE_N: as large as possible (amortizes ~0.35 us/grid-step overhead)
        # while the double-buffered joint block stays within a small budget.
        tn_cap = max(8, (self._JOINT_BLOCK_BUDGET
                         // (2 * self.k_block * 4)) // 8 * 8)
        self.tile_n = int(min(self._MAX_TILE_N, tn_cap, _round_up(n, 8)))
        self.n_pad = _round_up(n, self.tile_n)

        # Precomputed once (not per forward call): flattened, padded table.
        flat = joint.reshape(n, K)
        self.joint_flat = jnp.pad(flat, ((0, self.n_pad - n),
                                         (0, self.K_pad - K)))

        self._use_gather = None       # decided by a one-time lowering probe
        self._calls = {}

    # -- helpers ------------------------------------------------------------

    @staticmethod
    def _vmem_limit(tile_bytes):
        try:
            cap = pltpu.get_tpu_info().vmem_capacity_bytes
        except Exception:
            cap = 64 * 1024 * 1024    # conservative: v7x per-TensorCore VMEM
        return int(min(max(2 * tile_bytes, 16 * 1024 * 1024), int(0.6 * cap)))

    def _build_call(self, batch_pad, tile_b, use_gather):
        key = (batch_pad, tile_b, use_gather)
        if key in self._calls:
            return self._calls[key]

        n_pad, K_pad = self.n_pad, self.K_pad
        if use_gather:
            tile_n, k_block, nk = self.tile_n, self.k_block, self.nk
        else:
            # One-hot fallback: small tiles bound the (TN, TB, 128)
            # compare/select intermediate (it would spill otherwise).
            tile_n = 8
            tile_b = min(128, tile_b)
            k_block, nk = _choose_k_block(K_pad, 1024)

        grid_ij = (n_pad // tile_n, batch_pad // tile_b)
        joint_bytes = n_pad * K_pad * 4
        io_bytes = 2 * n_pad * batch_pad * 4

        if use_gather and nk == 1:
            kernel = functools.partial(_gather_kernel_2d, k_max=K_pad - 1)
            grid = grid_ij
            in_specs = [
                # Joint row depends only on the n axis -> stays resident in
                # VMEM while the batch axis iterates.
                pl.BlockSpec((tile_n, K_pad), lambda i, j: (i, 0)),
                pl.BlockSpec((tile_n, tile_b), lambda i, j: (i, j)),
            ]
            out_specs = pl.BlockSpec((tile_n, tile_b), lambda i, j: (i, j))
            dims = ("parallel", "parallel")      # batch is not a reduction
            bytes_accessed = joint_bytes + io_bytes
            joint_buf = tile_n * K_pad * 4
        else:
            if use_gather:
                kernel = functools.partial(_gather_kernel_3d, k_block=k_block)
            else:
                kernel = functools.partial(_onehot_kernel_3d,
                                           k_block=k_block, lane_chunk=_LANE)
            grid = grid_ij + (nk,)
            in_specs = [
                pl.BlockSpec((tile_n, k_block), lambda i, j, k: (i, k)),
                pl.BlockSpec((tile_n, tile_b), lambda i, j, k: (i, j)),
            ]
            out_specs = pl.BlockSpec((tile_n, tile_b), lambda i, j, k: (i, j))
            dims = ("parallel", "parallel", "arbitrary")
            bytes_accessed = joint_bytes * grid_ij[1] + io_bytes
            joint_buf = tile_n * k_block * 4

        tile_bytes = 2 * joint_buf + 4 * tile_n * tile_b * 4
        if not use_gather:
            tile_bytes += 2 * tile_n * tile_b * _LANE * 4

        cost = pl.CostEstimate(
            flops=8 * n_pad * batch_pad * nk,    # VALU-only; no MXU matmuls
            transcendentals=0,
            bytes_accessed=int(bytes_accessed))

        call = pl.pallas_call(
            kernel,
            out_shape=jax.ShapeDtypeStruct((n_pad, batch_pad), jnp.float32),
            grid=grid,
            in_specs=in_specs,
            out_specs=out_specs,
            compiler_params=pltpu.CompilerParams(
                dimension_semantics=dims,
                vmem_limit_bytes=self._vmem_limit(tile_bytes)),
            cost_estimate=cost)
        self._calls[key] = call
        return call

    # -- forward --------------------------------------------------------------

    def __call__(self, a, b, c):
        n, batch = a.shape
        assert n == self.n and b.shape == a.shape and c.shape == a.shape

        # Single flattened index stream (one XLA elementwise fusion).
        flat_idx = (a.astype(jnp.int32) * jnp.int32(self.B * self.C)
                    + b.astype(jnp.int32) * jnp.int32(self.C)
                    + c.astype(jnp.int32))

        tile_b = min(512, _round_up(batch, _LANE))   # lane-dense output tiles
        batch_pad = _round_up(batch, tile_b)
        flat_idx = jnp.pad(flat_idx, ((0, self.n_pad - n),
                                      (0, batch_pad - batch)))

        if self._use_gather is None:
            # One-time probe: prefer the in-VMEM lane gather; fall back to the
            # one-hot kernel if Mosaic rejects the gather lowering.
            try:
                out = self._build_call(batch_pad, tile_b, True)(
                    self.joint_flat, flat_idx)
                jax.block_until_ready(out)
                self._use_gather = True
            except Exception:
                self._use_gather = False
                out = self._build_call(batch_pad, tile_b, False)(
                    self.joint_flat, flat_idx)
        else:
            out = self._build_call(batch_pad, tile_b, self._use_gather)(
                self.joint_flat, flat_idx)

        return out[:n, :batch]


if __name__ == "__main__":
    key = jax.random.PRNGKey(0)
    k0, k1, k2, k3, k4, k5, k6, k7 = jax.random.split(key, 8)

    # --- Test 1: small K (single-block path), padded n / batch -------------
    n, A, B, C = 20, 3, 4, 5        # K = 60 -> padded to 128 lanes
    batch = 300                     # -> padded to 384
    joint = jax.random.normal(k0, (n, A, B, C), dtype=jnp.float32)
    a = jax.random.randint(k1, (n, batch), 0, A, dtype=jnp.int32)
    b = jax.random.randint(k2, (n, batch), 0, B, dtype=jnp.int32)
    c = jax.random.randint(k3, (n, batch), 0, C, dtype=jnp.int32)

    fwd = JointForward(joint)       # padded flat table precomputed once
    out = jax.block_until_ready(fwd(a, b, c))

    rows = jnp.broadcast_to(jnp.arange(n)[:, None], (n, batch))
    ref = joint[rows, a, b, c]
    assert out.shape == (n, batch)
    assert jnp.allclose(out, ref, atol=1e-6), "test 1 mismatch vs reference"

    # --- Test 2: blocked-K (3-axis grid) accumulation path -----------------
    n2, A2, B2, C2 = 9, 6, 7, 13    # K = 546 -> padded to 640 lanes
    batch2 = 700                    # -> 2 batch tiles of 512
    joint2 = jax.random.normal(k4, (n2, A2, B2, C2), dtype=jnp.float32)
    a2 = jax.random.randint(k5, (n2, batch2), 0, A2, dtype=jnp.int32)
    b2 = jax.random.randint(k6, (n2, batch2), 0, B2, dtype=jnp.int32)
    c2 = jax.random.randint(k7, (n2, batch2), 0, C2, dtype=jnp.int32)

    fwd2 = JointForward(joint2, max_k_block=256)   # force K blocking
    out2 = jax.block_until_ready(fwd2(a2, b2, c2))

    rows2 = jnp.broadcast_to(jnp.arange(n2)[:, None], (n2, batch2))
    ref2 = joint2[rows2, a2, b2, c2]
    assert out2.shape == (n2, batch2)
    assert jnp.allclose(out2, ref2, atol=1e-6), "test 2 mismatch vs reference"

    print("KERNEL_OK")
</pallas_src>

<mosaic_0001>
module attributes {stable_mosaic.version = 11 : i64} {
  func.func @_gather_kernel_2d(%arg0: i32, %arg1: i32, %arg2: memref<24x128xf32, #tpu.memory_space<vmem>>, %arg3: memref<24x384xi32, #tpu.memory_space<vmem>>, %arg4: memref<24x384xf32, #tpu.memory_space<vmem>>) attributes {dimension_semantics = [#tpu.dimension_semantics<parallel>, #tpu.dimension_semantics<parallel>], iteration_bounds = array<i64: 1, 1>, scalar_prefetch = 0 : i64, scratch_operands = 0 : i64, tpu.core_type = #tpu.core_type<tc>, window_params = [{transform_indices = @transform_0, window_bounds = array<i64: 24, 128>}, {transform_indices = @transform_1, window_bounds = array<i64: 24, 384>}, {transform_indices = @transform_2, window_bounds = array<i64: 24, 384>}]} {
    %c0 = arith.constant 0 : index
    %c0_0 = arith.constant 0 : index
    %0 = vector.load %arg3[%c0, %c0_0] : memref<24x384xi32, #tpu.memory_space<vmem>>, vector<24x384xi32>
    %c0_i32 = arith.constant 0 : i32
    %c127_i32 = arith.constant 127 : i32
    %1 = vector.broadcast %c0_i32 : i32 to vector<24x384xi32>
    %2 = arith.maxsi %1, %0 : vector<24x384xi32>
    %3 = vector.broadcast %c127_i32 : i32 to vector<24x384xi32>
    %4 = arith.minsi %3, %2 : vector<24x384xi32>
    %c0_1 = arith.constant 0 : index
    %c0_2 = arith.constant 0 : index
    %5 = vector.load %arg2[%c0_1, %c0_2] : memref<24x128xf32, #tpu.memory_space<vmem>>, vector<24x128xf32>
    %c0_i32_3 = arith.constant 0 : i32
    %6 = vector.broadcast %c0_i32_3 : i32 to vector<24x384xi32>
    %7 = arith.cmpi slt, %4, %6 : vector<24x384xi32>
    %c128_i32 = arith.constant 128 : i32
    %8 = vector.broadcast %c128_i32 : i32 to vector<24x384xi32>
    %9 = arith.addi %4, %8 : vector<24x384xi32>
    %10 = arith.select %7, %9, %4 : vector<24x384xi1>, vector<24x384xi32>
    %11 = vector.shape_cast %10 : vector<24x384xi32> to vector<24x384x1xi32>
    %12 = vector.shape_cast %11 : vector<24x384x1xi32> to vector<24x384xi32>
    %13 = tpu.dynamic_gather %5[%12] in [1] : vector<24x128xf32>, vector<24x384xi32> -> vector<24x384xf32>
    %c0_4 = arith.constant 0 : index
    %c0_5 = arith.constant 0 : index
    %14 = vector.load %arg4[%c0_4, %c0_5] : memref<24x384xf32, #tpu.memory_space<vmem>>, vector<24x384xf32>
    tpu.vector_store %arg4[%c0_4, %c0_5], %13 {strides = array<i32>} : memref<24x384xf32, #tpu.memory_space<vmem>>, vector<24x384xf32>,
    return
  }
  func.func @transform_0(%arg0: i32, %arg1: i32) -> (i32, i32) {
    %c0_i32 = arith.constant 0 : i32
    %c0_i32_0 = arith.constant 0 : i32
    return %arg0, %c0_i32 : i32, i32
  }
  func.func @transform_1(%arg0: i32, %arg1: i32) -> (i32, i32) {
    %c0_i32 = arith.constant 0 : i32
    return %arg0, %arg1 : i32, i32
  }
  func.func @transform_2(%arg0: i32, %arg1: i32) -> (i32, i32) {
    %c0_i32 = arith.constant 0 : i32
    return %arg0, %arg1 : i32, i32
  }
}

module attributes {stable_mosaic.version = 11 : i64} {
  func.func @_onehot_kernel_3d(%arg0: i32, %arg1: i32, %arg2: i32, %arg3: memref<8x128xf32, #tpu.memory_space<vmem>>, %arg4: memref<8x128xi32, #tpu.memory_space<vmem>>, %arg5: memref<8x128xf32, #tpu.memory_space<vmem>>) attributes {dimension_semantics = [#tpu.dimension_semantics<parallel>, #tpu.dimension_semantics<parallel>, #tpu.dimension_semantics<arbitrary>], iteration_bounds = array<i64: 3, 3, 1>, scalar_prefetch = 0 : i64, scratch_operands = 0 : i64, tpu.core_type = #tpu.core_type<tc>, window_params = [{transform_indices = @transform_0, window_bounds = array<i64: 8, 128>}, {transform_indices = @transform_1, window_bounds = array<i64: 8, 128>}, {transform_indices = @transform_2, window_bounds = array<i64: 8, 128>}]} {
    %c0_i32 = arith.constant 0 : i32
    %0 = arith.cmpi eq, %arg2, %c0_i32 : i32
    %1 = arith.extui %0 : i1 to i32
    %c0_i32_0 = arith.constant 0 : i32
    %2 = arith.cmpi ne, %1, %c0_i32_0 : i32
    scf.if %2 {
      %cst_11 = arith.constant 0.000000e+00 : f32
      %28 = vector.broadcast %cst_11 : f32 to vector<8x128xf32>
      %c0_12 = arith.constant 0 : index
      %c0_13 = arith.constant 0 : index
      %29 = vector.load %arg5[%c0_12, %c0_13] : memref<8x128xf32, #tpu.memory_space<vmem>>, vector<8x128xf32>
      tpu.vector_store %arg5[%c0_12, %c0_13], %28 {strides = array<i32>} : memref<8x128xf32, #tpu.memory_space<vmem>>, vector<8x128xf32>,
    } else {
    }
    %c0 = arith.constant 0 : index
    %c0_1 = arith.constant 0 : index
    %3 = vector.load %arg4[%c0, %c0_1] : memref<8x128xi32, #tpu.memory_space<vmem>>, vector<8x128xi32>
    %c128_i32 = arith.constant 128 : i32
    %4 = arith.muli %arg2, %c128_i32 : i32
    %5 = tpu.iota {dimensions = array<i32: 2>} : vector<1x1x128xi32>
    %cst = arith.constant 0.000000e+00 : f32
    %6 = vector.broadcast %cst : f32 to vector<8x128xf32>
    %c0_i32_2 = arith.constant 0 : i32
    %c128_i32_3 = arith.constant 128 : i32
    %7 = arith.muli %c0_i32_2, %c128_i32_3 : i32
    %8 = tpu.assume_multiple %7, 128 : i32
    %c0_4 = arith.constant 0 : index
    %9 = arith.index_cast %8 : i32 to index
    %10 = vector.load %arg3[%c0_4, %9] : memref<8x128xf32, #tpu.memory_space<vmem>>, vector<8x128xf32>
    %11 = vector.shape_cast %3 : vector<8x128xi32> to vector<8x128x1xi32>
    %12 = arith.addi %4, %8 : i32
    %13 = vector.broadcast %12 : i32 to vector<1x1x128xi32>
    %14 = arith.addi %5, %13 : vector<1x1x128xi32>
    %15 = vector.broadcast %11 : vector<8x128x1xi32> to vector<8x128x128xi32>
    %16 = vector.broadcast %14 : vector<1x1x128xi32> to vector<8x128x128xi32>
    %17 = arith.cmpi eq, %15, %16 : vector<8x128x128xi32>
    %18 = vector.shape_cast %10 : vector<8x128xf32> to vector<8x1x128xf32>
    %cst_5 = arith.constant 0.000000e+00 : f32
    %19 = vector.shape_cast %18 : vector<8x1x128xf32> to vector<8x1x128xf32>
    %20 = vector.broadcast %19 : vector<8x1x128xf32> to vector<8x128x128xf32>
    %21 = vector.broadcast %cst_5 : f32 to vector<8x128x128xf32>
    %22 = arith.select %17, %20, %21 : vector<8x128x128xi1>, vector<8x128x128xf32>
    %cst_6 = arith.constant dense<0.000000e+00> : vector<8x128xf32>
    %23 = vector.multi_reduction <add>, %22, %cst_6 [2] : vector<8x128x128xf32> to vector<8x128xf32>
    %24 = arith.addf %6, %23 : vector<8x128xf32>
    %c1_i32 = arith.constant 1 : i32
    %c0_7 = arith.constant 0 : index
    %c0_8 = arith.constant 0 : index
    %25 = vector.load %arg5[%c0_7, %c0_8] : memref<8x128xf32, #tpu.memory_space<vmem>>, vector<8x128xf32>
    %26 = arith.addf %25, %24 : vector<8x128xf32>
    %c0_9 = arith.constant 0 : index
    %c0_10 = arith.constant 0 : index
    %27 = vector.load %arg5[%c0_9, %c0_10] : memref<8x128xf32, #tpu.memory_space<vmem>>, vector<8x128xf32>
    tpu.vector_store %arg5[%c0_9, %c0_10], %26 {strides = array<i32>} : memref<8x128xf32, #tpu.memory_space<vmem>>, vector<8x128xf32>,
    return
  }
  func.func @transform_0(%arg0: i32, %arg1: i32, %arg2: i32) -> (i32, i32) {
    %c0_i32 = arith.constant 0 : i32
    return %arg0, %arg2 : i32, i32
  }
  func.func @transform_1(%arg0: i32, %arg1: i32, %arg2: i32) -> (i32, i32) {
    %c0_i32 = arith.constant 0 : i32
    return %arg0, %arg1 : i32, i32
  }
  func.func @transform_2(%arg0: i32, %arg1: i32, %arg2: i32) -> (i32, i32) {
    %c0_i32 = arith.constant 0 : i32
    return %arg0, %arg1 : i32, i32
  }
}

</mosaic_0001>

<bundles_post_ra>
// kernel: tpu_custom_call.1
= control target key start
LH: loop header
LB: loop body
LE: loop exit
PB: predicated region body
PF: predicated region fallthrough
CT: control target
= control target key end

     0   :  { %7 = vsyncpa [#allocation3], 0  ;;  %s306_s0 = inlined_call_operand.hbm [shape: f32[24,128], index: 0, kind: input, shape index: {}]   ;;  %s307_s1 = inlined_call_operand.hbm [shape: s32[24,384], index: 1, kind: input, shape index: {}]   ;;  %s308_s2 = inlined_call_operand.hbm [shape: f32[24,384], index: 2, kind: output, shape index: {}]  }
   0x1   :  { %8 = vsyncpa [#allocation6], 0 }
   0x2   :  { %9 = vsyncpa [#allocation4], 0  ;;  %s14_s11 = sshll.u32 %s306_s0, 4  ;;  %s269_s12 = smov [#allocation2]   ;;  %s15_s11 = int_to_ptr.hbm [resolvable:$true] %s14_s11 }
   0x3   :  { %s16_s13 = sshll.u32 %s269_s12, 4  ;;  %s27_s16 = sshll.u32 %s307_s1, 4  ;;  %s17_s13 = int_to_ptr.vmem [resolvable:$true] %s16_s13  ;;  %s28_s16 = int_to_ptr.hbm [resolvable:$true] %s27_s16 }
   0x4   :  { %s270_s17 = smov 128   ;;  %s271_s18 = smov 8  }
   0x5   :  { %22 = dma.hbm_to_vmem [thread:$0]  %s15_s11, 384, %s17_s13, [#allocation3], %s270_s17, %s270_s17, %s271_s18  }
   0x6   :  { %s272_s19 = smov [#allocation5]   ;;  %s273_s21 = smov 384  }
   0x7   :  { %s29_s20 = sshll.u32 %s272_s19, 4  ;;  %s274_s22 = smov 24   ;;  %s30_s20 = int_to_ptr.vmem [resolvable:$true] %s29_s20 }
   0x8   :  { %35 = dma.hbm_to_vmem [thread:$0]  %s28_s16, 1152, %s30_s20, [#allocation6], %s273_s21, %s273_s21, %s274_s22  }
   0x9   :  { %263 = dma.done.wait [#allocation3], 384  }
   0xa   :  { %264 = vsyncadd [#allocation3], 4294966912 }
   0xb   :  { %265 = dma.done.wait [#allocation6], 1152  }
   0xc   :  { %266 = vsyncadd [#allocation6], 4294966144  ;;  %v46_v0 = vld [vmem:[#allocation5 + $0x10] sm:$0xff]  ;;  %v44_v1 = vld [vmem:[#allocation5] sm:$0xff]  ;;  %s275_s0 = smov [#allocation7]   ;;  %s161_s25 = sshll.u32 %s308_s2, 4  ;;  %s162_s25 = int_to_ptr.hbm [resolvable:$true] %s161_s25 }
   0xd   :  { %vm57_vm0 = vcmp.gt.s32.totalorder %v46_v0, 0  ;;  %vm53_vm1 = vcmp.gt.s32.totalorder %v44_v1, 0  ;;  %v47_v2 = vld [vmem:[#allocation5 + $0x18] sm:$0xff]  ;;  %v45_v3 = vld [vmem:[#allocation5 + $0x8] sm:$0xff]  ;;  %v48_v6 = vld [vmem:[#allocation5 + $0x20] sm:$0xff]  ;;  %s159_s1 = sshll.u32 %s275_s0, 4  ;;  %s160_s1 = int_to_ptr.vmem [resolvable:$true] %s159_s1 }
   0xe   :  { %v58_v4 = vsel %vm57_vm0, %v46_v0, 0  ;;  %v54_v5 = vsel %vm53_vm1, %v44_v1, 0  ;;  %vm59_vm4 = vcmp.gt.s32.totalorder %v47_v2, 0  ;;  %vm55_vm5 = vcmp.gt.s32.totalorder %v45_v3, 0  ;;  %v49_v16 = vld [vmem:[#allocation5 + $0x28] sm:$0xff]  ;;  %v50_v26 = vld [vmem:[#allocation5 + $0x30] sm:$0xff] }
   0xf   :  { %vm75_vm2 = vcmp.lt.s32.totalorder %v58_v4, 127  ;;  %vm71_vm3 = vcmp.lt.s32.totalorder %v54_v5, 127  ;;  %vm61_vm8 = vcmp.gt.s32.totalorder %v48_v6, 0  ;;  %v60_v13 = vsel %vm59_vm4, %v47_v2, 0  ;;  %v89_v19 = vld [vmem:[#allocation2] sm:$0xff]  ;;  %v52_v27 = vld [vmem:[#allocation5 + $0x40] sm:$0xff] }
  0x10   :  { %v76_v7 = vsel %vm75_vm2, %v58_v4, 127  ;;  %v72_v8 = vsel %vm71_vm3, %v54_v5, 127  ;;  %v56_v14 = vsel %vm55_vm5, %v45_v3, 0  ;;  %v62_v15 = vsel %vm61_vm8, %v48_v6, 0  ;;  %v90_v31 = vld [vmem:[#allocation2 + $0x8] sm:$0xff]  ;;  %v51_v35 = vld [vmem:[#allocation5 + $0x38] sm:$0xff] }
  0x11   :  { %vm94_vm6 = vcmp.lt.s32.totalorder %v76_v7, 0  ;;  %v103_v9 = vadd.s32 128, %v76_v7  ;;  %vm92_vm7 = vcmp.lt.s32.totalorder %v72_v8, 0  ;;  %v101_v10 = vadd.s32 128, %v72_v8  ;;  %v91_v47 = vld [vmem:[#allocation2 + $0x10] sm:$0xff] }
  0x12   :  { %vm79_vm9 = vcmp.lt.s32.totalorder %v62_v15, 127  ;;  %vm77_vm10 = vcmp.lt.s32.totalorder %v60_v13, 127  ;;  %vm73_vm11 = vcmp.lt.s32.totalorder %v56_v14, 127  ;;  %vm63_vm13 = vcmp.gt.s32.totalorder %v49_v16, 0 }
  0x13   :  { %v112_v11 = vsel %vm94_vm6, %v103_v9, %v76_v7  ;;  %v110_v12 = vsel %vm92_vm7, %v101_v10, %v72_v8  ;;  %v80_v17 = vsel %vm79_vm9, %v62_v15, 127  ;;  %v78_v21 = vsel %vm77_vm10, %v60_v13, 127 }
  0x14   :  { %184 = vset.pattern.permute.xlu1 %v112_v11  ;;  %182 = vset.pattern.permute.xlu0 %v110_v12  ;;  %vm96_vm12 = vcmp.lt.s32.totalorder %v80_v17, 0  ;;  %v105_v18 = vadd.s32 128, %v80_v17  ;;  %v74_v22 = vsel %vm73_vm11, %v56_v14, 127  ;;  %v64_v23 = vsel %vm63_vm13, %v49_v16, 0 }
  0x15   :  { %v104_v24 = vadd.s32 128, %v78_v21  ;;  %v102_v25 = vadd.s32 128, %v74_v22  ;;  %vm81_vm14 = vcmp.lt.s32.totalorder %v64_v23, 127  ;;  %vm95_vm15 = vcmp.lt.s32.totalorder %v78_v21, 0 }
  0x16   :  { %v114_v20 = vsel %vm96_vm12, %v105_v18, %v80_v17  ;;  %vm93_vm0 = vcmp.lt.s32.totalorder %v74_v22, 0  ;;  %v82_v28 = vsel %vm81_vm14, %v64_v23, 127  ;;  %vm65_vm1 = vcmp.gt.s32.totalorder %v50_v26, 0 }
  0x17   :  { %186 = vset.pattern.permute.xlu2 %v114_v20  ;;  %v113_v29 = vsel %vm95_vm15, %v104_v24, %v78_v21  ;;  %v111_v30 = vsel %vm93_vm0, %v102_v25, %v74_v22  ;;  %vm69_vm2 = vcmp.gt.s32.totalorder %v52_v27, 0  ;;  %v106_v32 = vadd.s32 128, %v82_v28 }
  0x18   :  { %v66_v33 = vsel %vm65_vm1, %v50_v26, 0  ;;  %v70_v34 = vsel %vm69_vm2, %v52_v27, 0  ;;  %vm97_vm3 = vcmp.lt.s32.totalorder %v82_v28, 0  ;;  %vm67_vm6 = vcmp.gt.s32.totalorder %v51_v35, 0 }
  0x19   :  { %vm83_vm4 = vcmp.lt.s32.totalorder %v66_v33, 127  ;;  %vm87_vm5 = vcmp.lt.s32.totalorder %v70_v34, 127  ;;  %v115_v36 = vsel %vm97_vm3, %v106_v32, %v82_v28  ;;  %v68_v39 = vsel %vm67_vm6, %v51_v35, 0 }
  0x1a   :  { %v84_v37 = vsel %vm83_vm4, %v66_v33, 127  ;;  %v88_v38 = vsel %vm87_vm5, %v70_v34, 127  ;;  %vm85_vm7 = vcmp.lt.s32.totalorder %v68_v39, 127 }
  0x1b   :  { %v107_v40 = vadd.s32 128, %v84_v37  ;;  %v109_v41 = vadd.s32 128, %v88_v38  ;;  %vm98_vm8 = vcmp.lt.s32.totalorder %v84_v37, 0  ;;  %vm100_vm9 = vcmp.lt.s32.totalorder %v88_v38, 0 }
  0x1c   :  { %126 = vperm.xlu1 %184, %v89_v19   ;;  %120 = vperm.xlu0 %182, %v89_v19   ;;  %v86_v42 = vsel %vm85_vm7, %v68_v39, 127 }
  0x1d   :  { %v116_v43 = vsel %vm98_vm8, %v107_v40, %v84_v37  ;;  %v118_v44 = vsel %vm100_vm9, %v109_v41, %v88_v38  ;;  %v108_v45 = vadd.s32 128, %v86_v42  ;;  %vm99_vm10 = vcmp.lt.s32.totalorder %v86_v42, 0 }
  0x1f   :  { %132 = vperm.xlu2 %186, %v90_v31   ;;  %v117_v46 = vsel %vm99_vm10, %v108_v45, %v86_v42 }
  0x24   :  { %185 = vset.pattern.permute.xlu1 %v113_v29  ;;  %183 = vset.pattern.permute.xlu0 %v111_v30 }
  0x27   :  { %187 = vset.pattern.permute.xlu2 %v115_v36 }
  0x2c   :  { %129 = vperm.xlu1 %185, %v90_v31   ;;  %123 = vperm.xlu0 %183, %v89_v19  }
  0x2f   :  { %135 = vperm.xlu2 %187, %v90_v31  }
  0x34   :  { %188 = vset.pattern.permute.xlu1 %v116_v43  ;;  %190 = vset.pattern.permute.xlu0 %v118_v44 }
  0x37   :  { %189 = vset.pattern.permute.xlu2 %v117_v46 }
  0x3c   :  { %138 = vperm.xlu1 %188, %v91_v47   ;;  %144 = vperm.xlu0 %190, %v91_v47  }
  0x3f   :  { %141 = vperm.xlu2 %189, %v91_v47  }
  0x79   :  { %v133_v48 = vpop.permute.xlu2 %132 }
  0x7a   :  { %150 = vst [vmem:[#allocation7 + $0x20] sm:$0xff] %v133_v48 }
  0x89   :  { %v136_v49 = vpop.permute.xlu2 %135 }
  0x8a   :  { %151 = vst [vmem:[#allocation7 + $0x28] sm:$0xff] %v136_v49 }
  0x8e   :  { %v127_v50 = vpop.permute.xlu1 %126  ;;  %v121_v51 = vpop.permute.xlu0 %120 }
  0x8f   :  { %148 = vst [vmem:[#allocation7 + $0x10] sm:$0xff] %v127_v50 }
  0x90   :  { %146 = vst [vmem:[#allocation7] sm:$0xff] %v121_v51 }
  0x99   :  { %v142_v52 = vpop.permute.xlu2 %141 }
  0x9a   :  { %153 = vst [vmem:[#allocation7 + $0x38] sm:$0xff] %v142_v52 }
  0x9e   :  { %v130_v53 = vpop.permute.xlu1 %129  ;;  %v124_v54 = vpop.permute.xlu0 %123 }
  0x9f   :  { %149 = vst [vmem:[#allocation7 + $0x18] sm:$0xff] %v130_v53 }
  0xa0   :  { %147 = vst [vmem:[#allocation7 + $0x8] sm:$0xff] %v124_v54 }
  0xae   :  { %v139_v55 = vpop.permute.xlu1 %138  ;;  %v145_v56 = vpop.permute.xlu0 %144 }
  0xaf   :  { %152 = vst [vmem:[#allocation7 + $0x30] sm:$0xff] %v139_v55 }
  0xb0   :  { %154 = vst [vmem:[#allocation7 + $0x40] sm:$0xff] %v145_v56 }
  0xb1   :  { %167 = dma.vmem_to_hbm [thread:$0]  %s160_s1, 1152, %s162_s25, [#allocation4], %s273_s21, %s273_s21, %s274_s22  }
  0xb2   :  { %267 = dma.done.wait [#allocation4], 1152  }
  0xb3   :  { %268 = vsyncadd [#allocation4], 4294966144 }
  0xb4   :  { %172 = vsyncpa [#allocation3], 1 }
  0xb5   :  { %173 = vsyncpa [#allocation6], 1 }
  0xb6   :  { %174 = vsyncpa [#allocation4], 1 }

// kernel: tpu_custom_call.1
= control target key start
LH: loop header
LB: loop body
LE: loop exit
PB: predicated region body
PF: predicated region fallthrough
CT: control target
= control target key end

     0   :  { %s4131_s0 = inlined_call_operand.hbm [shape: f32[24,128], index: 0, kind: input, shape index: {}]   ;;  %s4132_s1 = inlined_call_operand.hbm [shape: s32[24,384], index: 1, kind: input, shape index: {}]   ;;  %s4133_s2 = inlined_call_operand.hbm [shape: f32[24,384], index: 2, kind: output, shape index: {}]  }
   0x1   :  { %4145 = sst [smem:[#allocation49_spill]] %s4131_s0 }
   0x2   :  { %7 = vsyncpa [#allocation3], 0 }
   0x3   :  { %9 = vsyncpa [#allocation3 + $0x1], 0 }
   0x4   :  { %10 = vsyncpa [#allocation6], 0 }
   0x5   :  { %12 = vsyncpa [#allocation6 + $0x1], 0 }
   0x6   :  { %13 = vsyncpa [#allocation4], 0 }
   0x7   :  { %15 = vsyncpa [#allocation4 + $0x1], 0  ;;  %s2683_s9 = smov 0   ;;  %s2685_s10 = smov 0  }
   0x8   :  { %s2687_s11 = smov 0   ;;  %s2689_s12 = smov 0  }
   0x9   :  { %s2691_s13 = smov 0   ;;  %s2693_s14 = smov 0  }
   0xa   :  { %s2695_s15 = smov 0   ;;  %s2697_s16 = smov 0  }
   0xb   :  { %s2699_s17 = smov 0   ;;  %s2701_s18 = smov 0  }
   0xc   :  { %s2703_s19 = smov 0  }
   0xd LB: > { %4146 = sst [smem:[#allocation11_spill]] %s2626_s9  ;;  %s2235_s20 = sadd.s32 4294967295, %s2666_s19   ;;  %s2666_s19 = sphi %s2703_s19, %s21_s19   ;;  %s2662_s18 = sphi %s2701_s18, %s4272_s18   ;;  %s2658_s17 = sphi %s2699_s17, %s4271_s17   ;;  %s2654_s16 = sphi %s2697_s16, %s4270_s16   ;;  %s2650_s15 = sphi %s2695_s15, %s4269_s15   ;;  %s2646_s14 = sphi %s2693_s14, %s4268_s14   ;;  %s2642_s13 = sphi %s2691_s13, %s4267_s13   ;;  %s2638_s12 = sphi %s2689_s12, %s4266_s12   ;;  %s2634_s11 = sphi %s2687_s11, %s4265_s11   ;;  %s2630_s10 = sphi %s2685_s10, %s4264_s10   ;;  %s2626_s9 = sphi %s2683_s9, %s4263_s9  }
   0xe   : > { %s49_s21 = sadd.s32 1, %s2646_s14  ;;  %p56_p0 = scmp.ne.s32.totalorder %s2646_s14, %s2642_s13 }
   0xf   : > { %p57_p1 = scmp.eq.s32.totalorder %s2666_s19, 0  ;;  %p62_p2 = scmp.ne.s32.totalorder %s2642_s13, %s2638_s12 }
  0x10   : > { %p2744_p3 = scmp.eq.s32.totalorder %s2235_s20, 0  ;;  %p2270_p6 = scmp.lt.s32.totalorder %s2666_s19, 9 }
  0x11   : > { %p58_p4 = por %p57_p1, %p56_p0  ;;  %s142_s24 = sand.u32 1, %s2646_s14  }
  0x12   : > { %p2752_p5 = por %p2744_p3, %p62_p2  ;;  %s2240_s25 = sshll.u32 %s2662_s18, 3 }
  0x13   : > { %s2239_s26 = sshll.u32 %s142_s24, 3  ;;  %s4149_s0 = sld [smem:[#allocation49_spill]] }
  0x14   : > { %s146_s3 = scalar_lea.vmem [#allocation2], %s2239_s26  ;;  %p2260_p7 = pnand %p2270_p6, %p58_p4 }
  0x15   : > { %s155_s4 = sshll.u32 %s146_s3, 4  ;;  %p2243_p8 = scmp.ge.s32.totalorder %s2666_s19, 1  ;;  %s156_s4 = int_to_ptr.vmem [resolvable:$true] %s155_s4 }
  0x16   : > { %p181_p9 = scmp.lt.s32.totalorder %s2666_s19, 10  ;;  %s143_s5 = scalar_lea.sflag [#allocation3], %s142_s24 }
  0x17   : > { %s2236_s7 = sadd.s32 4294967294, %s2666_s19   ;;  %s36_s8 = sadd.s32 1, %s2658_s17 }
  0x18   : > { %p2766_p10 = pnand %p2243_p8, %p181_p9  ;;  %s40_s12 = sadd.s32 1, %s2662_s18 }
  0x19   : > { %s151_s29 = scalar_lea.hbm %s4149_s0, %s2240_s25  ;;  %p38_p11 = scmp.ge.s32.totalorder %s36_s8, 3 }
  0x1a   : > { %s153_s30 = sshll.u32 %s151_s29, 4  ;;  %s77_s25 = sadd.s32 1, %s2634_s11  ;;  %s154_s30 = int_to_ptr.hbm [resolvable:$true] %s153_s30 }
  0x1b   : > { %2262 = dma.hbm_to_vmem [thread:$0]  (!%p2260_p7), %s154_s30, 128, %s156_s4, %s143_s5  }
  0x1c   : > { %p84_p12 = scmp.ne.s32.totalorder %s2634_s11, %s2630_s10  ;;  %p90_p13 = scmp.ne.s32.totalorder %s2630_s10, %s2626_s9 }
  0x1d   : > { %s4274_s8 = smov (%p38_p11, %s36_s8), 0  ;;  %s4276_s12 = smov (!%p38_p11, %s40_s12), %s2662_s18 }
  0x1e   : > { %4151 = sst [smem:[#allocation12_spill]] %s4274_s8  ;;  %s73_s24 = ssub.s32 %s2658_s17, %s4274_s8 }
  0x1f   : > { %p2785_p0 = por %p84_p12, %p57_p1  ;;  %p42_p2 = scmp.ge.s32.totalorder %s4276_s12, 3 }
  0x20   : > { %p2791_p4 = por %p90_p13, %p2744_p3  ;;  %p116_p7 = scmp.eq.s32.totalorder %s2235_s20, 8 }
  0x21   : > { %p122_p8 = scmp.eq.s32.totalorder %s2236_s7, 8  ;;  %s4278_s12 = smov (%p42_p2, %s4276_s12), 0 }
  0x22   : > { %4154 = sst [smem:[#allocation13_spill]] %s4278_s12  ;;  %p2799_p1 = por %p116_p7, %p84_p12 }
  0x23   : > { %p2803_p9 = por %p122_p8, %p90_p13  ;;  %s44_s22 = ssub.s32 %s2662_s18, %s4278_s12 }
  0x24   : > { %s4155_s28 = scalar_select %p2799_p1, 1, 0 }
  0x25   : > { %s4157_s29 = scalar_select %p2803_p9, 1, 0 }
  0x26   : > { %4156 = sst [smem:[#allocation14_spill]] %s4155_s28  ;;  %s162_s30 = sand.u32 1, %s2634_s11  }
  0x27   : > { %4158 = sst [smem:[#allocation15_spill]] %s4157_s29  ;;  %p47_p3 = scmp.eq.s32.totalorder %s44_s22, 0 }
  0x28   : > { %s74_s3 = sor.u32 %s73_s24, %s44_s22  ;;  %s2241_s5 = sshll.u32 %s162_s30, 3 }
  0x29   : > { %p75_p11 = scmp.eq.s32.totalorder %s74_s3, 0  ;;  %s2251_s7 = smul.u32 3, %s2662_s18 }
  0x2a   : > { %s2813_s4 = scalar_select %p47_p3, %s2646_s14, %s49_s21  }
  0x2b   : > { %s2816_s20 = scalar_select %p75_p11, %s2634_s11, %s77_s25  }
  0x2c   : > { %p2263_p12 = pnand %p2270_p6, %p2785_p0  ;;  %s170_s0 = sadd.s32 %s2658_s17, %s2251_s7 }
  0x2d   : > { %s166_s8 = scalar_lea.vmem [#allocation5], %s2241_s5  ;;  %s2242_s28 = sshll.u32 %s170_s0, 3 }
  0x2e   : > { %s176_s9 = sshll.u32 %s166_s8, 4  ;;  %s172_s24 = scalar_lea.hbm %s4132_s1, %s2242_s28  ;;  %s177_s9 = int_to_ptr.vmem [resolvable:$true] %s176_s9 }
  0x2f   : > { %s174_s22 = sshll.u32 %s172_s24, 4  ;;  %s163_s21 = scalar_lea.sflag [#allocation6], %s162_s30  ;;  %s175_s22 = int_to_ptr.hbm [resolvable:$true] %s174_s22 }
  0x30   : > { %2265 = dma.hbm_to_vmem [thread:$0]  (!%p2263_p12), %s175_s22, 128, %s177_s9, %s163_s21  }
  0x31   : > { %185 = sbr.rel (%p2766_p10) target bundleno = 1377 (0x561), region = 28 }
  0x36   : > { %s187_s25 = sand.u32 1, %s2642_s13  }
  0x37   : > { %s2830_s26 = sshll.u32 %s187_s25, 3  ;;  %s188_s8 = scalar_lea.sflag [#allocation3], %s187_s25 }
  0x38   : > { %s191_s0 = scalar_lea.vmem [#allocation2], %s2830_s26 }
  0x39   : > { %2613 = dma.done.wait (%p2752_p5), %s188_s8, 128  }
  0x3a   : > { %2615 = vsyncadd (%p2752_p5), %s188_s8, 4294967168  ;;  %s2838_s12 = sand.u32 1, %s2630_s10  }
  0x3b   : > { %s2245_s9 = sshll.u32 %s2838_s12, 3  ;;  %s198_s6 = scalar_lea.sflag [#allocation6], %s2838_s12 }
  0x3c   : > { %s201_s28 = scalar_lea.vmem [#allocation5], %s2245_s9 }
  0x3d   : > { %2617 = dma.done.wait (%p2791_p4), %s198_s6, 128  }
  0x3e   : > { %2619 = vsyncadd (%p2791_p4), %s198_s6, 4294967168  ;;  %v235_v0 = vlaneseq  ;;  %v2860_v4 = vld [vmem:[%s201_s28] sm:$0xff]  ;;  %v3057_v47 = vld [vmem:[%s191_s0] sm:$0xff]  ;;  %s2252_s23 = smul.u32 3, %s2654_s16  ;;  %s227_s5 = scalar_lea.vmem [#allocation7], %s2245_s9 }
  0x3f   : > { %v2863_v5 = vperm.slane %v2860_v4, 0  ;;  %v2869_v6 = vperm.slane %v2860_v4, 3  ;;  %v2923_v16 = vperm.slane %v2860_v4, 4  ;;  %v335_v19 = vperm.slane %v2860_v4, 1  ;;  %s2120_s7 = sshll.u32 %s227_s5, 4  ;;  %s2106_s22 = scalar_lea.sflag [#allocation4], %s2838_s12  ;;  %s2121_s7 = int_to_ptr.vmem [resolvable:$true] %s2120_s7 }
  0x40   : > { %v2849_v1 = vshrl.u32 %v235_v0, 7  ;;  %v2947_v20 = vperm.slane %v2860_v4, 5  ;;  %v2974_v23 = vperm.slane %v2860_v4, 6  ;;  %v432_v24 = vperm.slane %v2860_v4, 2  ;;  %s2116_s16 = sadd.s32 %s2650_s15, %s2252_s23  ;;  %s2560_s0 = scalar_lea.hbm %s4133_s2, 72 }
  0x41   : > { %v3003_v29 = vperm.slane %v2860_v4, 7  ;;  %v3060_v48 = vand.u32 127, %v235_v0  ;;  %v3069_v51 = vperm.slane %v3057_v47, 0  ;;  %s2248_s27 = sshll.u32 %s2116_s16, 3 }
  0x42   : > { %2361 = vset.pattern.permute.xlu0 %v2849_v1  ;;  %v2853_v2 = vadd.s32 32, %v2849_v1  ;;  %v2856_v3 = vadd.s32 16, %v2849_v1  ;;  %v2872_v7 = vadd.s32 40, %v2849_v1  ;;  %v2875_v8 = vadd.s32 24, %v2849_v1  ;;  %s2118_s30 = scalar_lea.hbm %s4133_s2, %s2248_s27 }
  0x43   : > { %v2884_v9 = vadd.s32 56, %v2849_v1  ;;  %v2887_v10 = vadd.s32 48, %v2849_v1  ;;  %v2893_v11 = vadd.s32 80, %v2849_v1  ;;  %v2899_v12 = vadd.s32 72, %v2849_v1  ;;  %s2122_s24 = sshll.u32 %s2118_s30, 4  ;;  %s2123_s24 = int_to_ptr.hbm [resolvable:$true] %s2122_s24 }
  0x44   : > { %2364 = vset.pattern.permute.xlu2 %v2853_v2  ;;  %2362 = vset.pattern.permute.xlu1 %v2856_v3  ;;  %v2905_v13 = vadd.s32 120, %v2849_v1  ;;  %v2911_v14 = vadd.s32 96, %v2849_v1  ;;  %v2914_v15 = vadd.s32 88, %v2849_v1  ;;  %v2926_v17 = vadd.s32 112, %v2849_v1  ;;  %s2554_s21 = sshra.s32 %s2123_s24, 4  ;;  %s2555_s21 = int_to_ptr.hbm [resolvable:$true] %s2554_s21 }
  0x45   : > { %v2935_v18 = vadd.s32 8, %v2849_v1  ;;  %v2953_v21 = vadd.s32 64, %v2849_v1  ;;  %v2961_v22 = vadd.s32 104, %v2849_v1  ;;  %s2556_s25 = scalar_lea.hbm %s2555_s21, 8  ;;  %p2561_p13 = scmp.lt.s32.totalorder %s2555_s21, %s4133_s2 }
  0x46   : > { %p2557_p5 = scmp.ne.s32.totalorder %s2555_s21, %s2556_s25  ;;  %p2562_p0 = scmp.lt.s32.totalorder %s2560_s0, %s2556_s25 }
  0x48   : > { %p2558_p6 = pnand %p2557_p5, %p2799_p1  ;;  %p2563_p2 = por %p2562_p0, %p2561_p13 }
  0x4a   : > { %243 = vperm.xlu0 %2361, %v2863_v5   ;;  %p2559_p10 = pneg %p2558_p6 }
  0x4c   : > { %267 = vperm.xlu2 %2364, %v2863_v5   ;;  %255 = vperm.xlu1 %2362, %v2863_v5   ;;  %p2564_p4 = pnand %p2563_p2, %p2559_p10 }
  0x52   : > { %534 = vperm.xlu0 %2361, %v2869_v6  }
  0x54   : > { %2365 = vset.pattern.permute.xlu2 %v2872_v7  ;;  %2363 = vset.pattern.permute.xlu1 %v2875_v8 }
  0x5a   : > { %2404 = vset.pattern.permute.xlu0 %v2872_v7 }
  0x5c   : > { %273 = vperm.xlu2 %2365, %v2863_v5   ;;  %261 = vperm.xlu1 %2363, %v2863_v5  }
  0x62   : > { %564 = vperm.xlu0 %2404, %v2869_v6  }
  0x64   : > { %2367 = vset.pattern.permute.xlu2 %v2884_v9  ;;  %2366 = vset.pattern.permute.xlu1 %v2887_v10 }
  0x6a   : > { %2409 = vset.pattern.permute.xlu0 %v2893_v11 }
  0x6c   : > { %285 = vperm.xlu2 %2367, %v2863_v5   ;;  %279 = vperm.xlu1 %2366, %v2863_v5  }
  0x72   : > { %594 = vperm.xlu0 %2409, %v2869_v6  }
  0x74   : > { %2369 = vset.pattern.permute.xlu2 %v2893_v11  ;;  %2368 = vset.pattern.permute.xlu1 %v2899_v12 }
  0x7a   : > { %2414 = vset.pattern.permute.xlu0 %v2905_v13 }
  0x7c   : > { %303 = vperm.xlu2 %2369, %v2863_v5   ;;  %297 = vperm.xlu1 %2368, %v2863_v5  }
  0x82   : > { %624 = vperm.xlu0 %2414, %v2869_v6  }
  0x84   : > { %2371 = vset.pattern.permute.xlu2 %v2911_v14  ;;  %2370 = vset.pattern.permute.xlu1 %v2914_v15 }
  0x8a   : > { %2419 = vset.pattern.permute.xlu0 %v2853_v2 }
  0x8c   : > { %315 = vperm.xlu2 %2371, %v2863_v5   ;;  %309 = vperm.xlu1 %2370, %v2863_v5  }
  0x92   : > { %655 = vperm.xlu0 %2419, %v2923_v16  }
  0x94   : > { %2373 = vset.pattern.permute.xlu2 %v2905_v13  ;;  %2372 = vset.pattern.permute.xlu1 %v2926_v17 }
  0x9a   : > { %2424 = vset.pattern.permute.xlu0 %v2899_v12 }
  0x9c   : > { %333 = vperm.xlu2 %2373, %v2863_v5   ;;  %327 = vperm.xlu1 %2372, %v2863_v5  }
  0xa2   : > { %685 = vperm.xlu0 %2424, %v2923_v16  }
  0xa4   : > { %2375 = vset.pattern.permute.xlu2 %v2935_v18  ;;  %2374 = vset.pattern.permute.xlu1 %v2849_v1 }
  0xa6   : > { %v268_v36 = vpop.permute.xlu2 %267 }
  0xa7   : > { %vm1021_vm1 = vcmp.eq.s32.totalorder %v268_v36, %v3060_v48 }
  0xa8   : > { %v1173_v57 = vsel %vm1021_vm1, %v3069_v51, 0.0 }
  0xaa   : > { %2429 = vset.pattern.permute.xlu0 %v2926_v17 }
  0xac   : > { %346 = vperm.xlu2 %2375, %v335_v19   ;;  %340 = vperm.xlu1 %2374, %v335_v19  }
  0xb2   : > { %715 = vperm.xlu0 %2429, %v2923_v16  }
  0xb4   : > { %2377 = vset.pattern.permute.xlu2 %v2853_v2  ;;  %2376 = vset.pattern.permute.xlu1 %v2875_v8 }
  0xb6   : > { %v3039_v39 = vpop.permute.xlu2 %273 }
  0xba   : > { %2434 = vset.pattern.permute.xlu0 %v2875_v8 }
  0xbc   : > { %364 = vperm.xlu2 %2377, %v335_v19   ;;  %358 = vperm.xlu1 %2376, %v335_v19   ;;  %v2987_v25 = vpop.permute.xlu0 %243 }
  0xbd   : > { %vm1017_vm0 = vcmp.eq.s32.totalorder %v2987_v25, %v3060_v48 }
  0xbe   : > { %v3032_v37 = vpop.permute.xlu1 %255  ;;  %v1169_v53 = vsel %vm1017_vm0, %v3069_v51, 0.0 }
  0xc2   : > { %746 = vperm.xlu0 %2434, %v2947_v20  }
  0xc4   : > { %2379 = vset.pattern.permute.xlu2 %v2887_v10  ;;  %2378 = vset.pattern.permute.xlu1 %v2872_v7  ;;  %v2990_v26 = vpop.permute.xlu0 %534 }
  0xc5   : > { %4159 = vst [vmem:[#allocation16_spill] sm:$0xff] %v2990_v26 }
  0xc6   : > { %v286_v42 = vpop.permute.xlu2 %285 }
  0xc7   : > { %vm1024_vm2 = vcmp.eq.s32.totalorder %v286_v42, %v3060_v48 }
  0xc8   : > { %v1176_v60 = vsel %vm1024_vm2, %v3069_v51, 0.0 }
  0xca   : > { %2435 = vset.pattern.permute.xlu0 %v2953_v21 }
  0xcc   : > { %376 = vperm.xlu2 %2379, %v335_v19   ;;  %370 = vperm.xlu1 %2378, %v335_v19  }
  0xce   : > { %v3041_v40 = vpop.permute.xlu1 %261 }
  0xd2   : > { %291 = vperm.xlu0 %2435, %v2863_v5  }
  0xd4   : > { %2381 = vset.pattern.permute.xlu2 %v2899_v12  ;;  %2380 = vset.pattern.permute.xlu1 %v2953_v21  ;;  %v2995_v27 = vpop.permute.xlu0 %564 }
  0xd5   : > { %4160 = vst [vmem:[#allocation17_spill] sm:$0xff] %v2995_v27 }
  0xd6   : > { %v304_v44 = vpop.permute.xlu2 %303 }
  0xd7   : > { %vm1027_vm3 = vcmp.eq.s32.totalorder %v304_v44, %v3060_v48 }
  0xd8   : > { %v1179_v0 = vsel %vm1027_vm3, %v3069_v51, 0.0 }
  0xda   : > { %776 = vperm.xlu0 %2435, %v2947_v20  }
  0xdc   : > { %394 = vperm.xlu2 %2381, %v335_v19   ;;  %388 = vperm.xlu1 %2380, %v335_v19  }
  0xde   : > { %v3045_v43 = vpop.permute.xlu1 %279 }
  0xe2   : > { %2440 = vset.pattern.permute.xlu0 %v2961_v22 }
  0xe4   : > { %2383 = vset.pattern.permute.xlu2 %v2914_v15  ;;  %2382 = vset.pattern.permute.xlu1 %v2893_v11  ;;  %v2998_v28 = vpop.permute.xlu0 %594 }
  0xe5   : > { %vm1075_vm3 = vcmp.eq.s32.totalorder %v2998_v28, %v3060_v48  ;;  %v1149_v28 = vrot.slane %v3057_v47, 4 }
  0xe6   : > { %v3062_v49 = vpop.permute.xlu2 %315 }
  0xea   : > { %321 = vperm.xlu0 %2440, %v2863_v5  }
  0xec   : > { %406 = vperm.xlu2 %2383, %v335_v19   ;;  %400 = vperm.xlu1 %2382, %v335_v19  }
  0xee   : > { %v3049_v45 = vpop.permute.xlu1 %297 }
  0xf2   : > { %806 = vperm.xlu0 %2440, %v2947_v20  }
  0xf4   : > { %2385 = vset.pattern.permute.xlu2 %v2926_v17  ;;  %2384 = vset.pattern.permute.xlu1 %v2961_v22  ;;  %v3005_v30 = vpop.permute.xlu0 %624 }
  0xf5   : > { %4161 = vst [vmem:[#allocation18_spill] sm:$0xff] %v3005_v30 }
  0xf6   : > { %v3076_v54 = vpop.permute.xlu2 %333 }
  0xfa   : > { %2445 = vset.pattern.permute.xlu0 %v2856_v3 }
  0xfc   : > { %424 = vperm.xlu2 %2385, %v335_v19   ;;  %418 = vperm.xlu1 %2384, %v335_v19  }
  0xfe   : > { %v3064_v50 = vpop.permute.xlu1 %309 }
 0x102   : > { %352 = vperm.xlu0 %2445, %v335_v19  }
 0x104   : > { %2387 = vset.pattern.permute.xlu2 %v2849_v1  ;;  %2386 = vset.pattern.permute.xlu1 %v2905_v13  ;;  %v3008_v31 = vpop.permute.xlu0 %655 }
 0x105   : > { %4162 = vst [vmem:[#allocation19_spill] sm:$0xff] %v3008_v31  ;;  %v1147_v31 = vrot.slane %v3057_v47, 2 }
 0x106   : > { %v3086_v58 = vpop.permute.xlu2 %346 }
 0x10a   : > { %837 = vperm.xlu0 %2445, %v2974_v23  }
 0x10c   : > { %437 = vperm.xlu2 %2387, %v432_v24   ;;  %430 = vperm.xlu1 %2386, %v335_v19  }
 0x10e   : > { %v3078_v55 = vpop.permute.xlu1 %327 }
 0x112   : > { %2450 = vset.pattern.permute.xlu0 %v2884_v9 }
 0x114   : > { %2389 = vset.pattern.permute.xlu2 %v2875_v8  ;;  %2388 = vset.pattern.permute.xlu1 %v2856_v3  ;;  %v3013_v32 = vpop.permute.xlu0 %685 }
 0x116   : > { %v3094_v62 = vpop.permute.xlu2 %364 }
 0x11a   : > { %382 = vperm.xlu0 %2450, %v335_v19  }
 0x11c   : > { %455 = vperm.xlu2 %2389, %v432_v24   ;;  %449 = vperm.xlu1 %2388, %v432_v24  }
 0x11e   : > { %v341_v59 = vpop.permute.xlu1 %340 }
 0x11f   : > { %vm1033_vm5 = vcmp.eq.s32.totalorder %v341_v59, %v3060_v48 }
 0x122   : > { %867 = vperm.xlu0 %2450, %v2974_v23  }
 0x124   : > { %2391 = vset.pattern.permute.xlu2 %v2872_v7  ;;  %2390 = vset.pattern.permute.xlu1 %v2853_v2  ;;  %v3018_v33 = vpop.permute.xlu0 %715 }
 0x125   : > { %4163 = vst [vmem:[#allocation20_spill] sm:$0xff] %v3018_v33 }
 0x126   : > { %v377_v4 = vpop.permute.xlu2 %376 }
 0x127   : > { %vm1039_vm7 = vcmp.eq.s32.totalorder %v377_v4, %v3060_v48 }
 0x12a   : > { %2455 = vset.pattern.permute.xlu0 %v2911_v14 }
 0x12c   : > { %467 = vperm.xlu2 %2391, %v432_v24   ;;  %461 = vperm.xlu1 %2390, %v432_v24  }
 0x12e   : > { %v359_v63 = vpop.permute.xlu1 %358 }
 0x12f   : > { %vm1036_vm6 = vcmp.eq.s32.totalorder %v359_v63, %v3060_v48 }
 0x132   : > { %412 = vperm.xlu0 %2455, %v335_v19  }
 0x134   : > { %2393 = vset.pattern.permute.xlu2 %v2953_v21  ;;  %2392 = vset.pattern.permute.xlu1 %v2884_v9  ;;  %v3023_v34 = vpop.permute.xlu0 %746 }
 0x135   : > { %4164 = vst [vmem:[#allocation21_spill] sm:$0xff] %v3023_v34 }
 0x136   : > { %v395_v25 = vpop.permute.xlu2 %394 }
 0x137   : > { %vm1042_vm8 = vcmp.eq.s32.totalorder %v395_v25, %v3060_v48 }
 0x13a   : > { %897 = vperm.xlu0 %2455, %v2974_v23  }
 0x13c   : > { %485 = vperm.xlu2 %2393, %v432_v24   ;;  %479 = vperm.xlu1 %2392, %v432_v24  }
 0x142   : > { %2460 = vset.pattern.permute.xlu0 %v2935_v18 }
 0x144   : > { %2395 = vset.pattern.permute.xlu2 %v2893_v11  ;;  %2394 = vset.pattern.permute.xlu1 %v2899_v12  ;;  %v3027_v35 = vpop.permute.xlu0 %291 }
 0x14a   : > { %249 = vperm.xlu0 %2460, %v2863_v5   ;;  %v3100_v5 = vpop.permute.xlu1 %370 }
 0x14c   : > { %497 = vperm.xlu2 %2395, %v432_v24   ;;  %491 = vperm.xlu1 %2394, %v432_v24   ;;  %v3034_v38 = vpop.permute.xlu0 %776 }
 0x152   : > { %443 = vperm.xlu0 %2460, %v432_v24   ;;  %v3109_v36 = vpop.permute.xlu1 %388 }
 0x154   : > { %2397 = vset.pattern.permute.xlu2 %v2961_v22  ;;  %2396 = vset.pattern.permute.xlu1 %v2911_v14 }
 0x15a   : > { %928 = vperm.xlu0 %2460, %v3003_v29  }
 0x15c   : > { %515 = vperm.xlu2 %2397, %v432_v24   ;;  %509 = vperm.xlu1 %2396, %v432_v24   ;;  %v322_v41 = vpop.permute.xlu0 %321 }
 0x15d   : > { %vm1030_vm4 = vcmp.eq.s32.totalorder %v322_v41, %v3060_v48 }
 0x162   : > { %2465 = vset.pattern.permute.xlu0 %v2887_v10 }
 0x164   : > { %2399 = vset.pattern.permute.xlu2 %v2905_v13  ;;  %2398 = vset.pattern.permute.xlu1 %v2926_v17  ;;  %v3051_v46 = vpop.permute.xlu0 %806 }
 0x165   : > { %4165 = vst [vmem:[#allocation22_spill] sm:$0xff] %v3051_v46 }
 0x16a   : > { %473 = vperm.xlu0 %2465, %v432_v24  }
 0x16c   : > { %527 = vperm.xlu2 %2399, %v432_v24   ;;  %521 = vperm.xlu1 %2398, %v432_v24  }
 0x172   : > { %958 = vperm.xlu0 %2465, %v3003_v29  }
 0x174   : > { %2401 = vset.pattern.permute.xlu2 %v2856_v3  ;;  %2400 = vset.pattern.permute.xlu1 %v2935_v18  ;;  %v3071_v52 = vpop.permute.xlu0 %352 }
 0x17a   : > { %2470 = vset.pattern.permute.xlu0 %v2914_v15 }
 0x17c   : > { %546 = vperm.xlu2 %2401, %v2869_v6   ;;  %540 = vperm.xlu1 %2400, %v2869_v6   ;;  %v3081_v56 = vpop.permute.xlu0 %837 }
 0x17d   : > { %4166 = vst [vmem:[#allocation23_spill] sm:$0xff] %v3081_v56 }
 0x182   : > { %503 = vperm.xlu0 %2470, %v432_v24   ;;  %v1182_v24 = vsel %vm1030_vm4, %v3069_v51, 0.0 }
 0x184   : > { %2403 = vset.pattern.permute.xlu2 %v2853_v2  ;;  %2402 = vset.pattern.permute.xlu1 %v2875_v8 }
 0x18a   : > { %988 = vperm.xlu0 %2470, %v3003_v29  }
 0x18c   : > { %558 = vperm.xlu2 %2403, %v2869_v6   ;;  %552 = vperm.xlu1 %2402, %v2869_v6   ;;  %v3092_v61 = vpop.permute.xlu0 %382 }
 0x192   : > { %2479 = vset.pattern.permute.xlu0 %v2905_v13 }
 0x194   : > { %2406 = vset.pattern.permute.xlu2 %v2884_v9  ;;  %2405 = vset.pattern.permute.xlu1 %v2887_v10  ;;  %v3102_v19 = vpop.permute.xlu0 %867 }
 0x19c   : > { %576 = vperm.xlu2 %2406, %v2869_v6   ;;  %570 = vperm.xlu1 %2405, %v2869_v6  }
 0x1a4   : > { %2408 = vset.pattern.permute.xlu2 %v2899_v12  ;;  %2407 = vset.pattern.permute.xlu1 %v2953_v21  ;;  %v413_v42 = vpop.permute.xlu0 %412 }
 0x1a5   : > { %vm1045_vm9 = vcmp.eq.s32.totalorder %v413_v42, %v3060_v48 }
 0x1ac   : > { %588 = vperm.xlu2 %2408, %v2869_v6   ;;  %582 = vperm.xlu1 %2407, %v2869_v6  }
 0x1b4   : > { %2411 = vset.pattern.permute.xlu2 %v2911_v14  ;;  %2410 = vset.pattern.permute.xlu1 %v2914_v15 }
 0x1b5   : > { %1297 = vadd.xlane.f32.xlu0 %v1169_v53  ;;  %v3117_v53 = vpop.permute.xlu2 %406 }
 0x1bc   : > { %606 = vperm.xlu2 %2411, %v2869_v6   ;;  %600 = vperm.xlu1 %2410, %v2869_v6  }
 0x1bd   : > { %1305 = vadd.xlane.f32.xlu0 %v1173_v57  ;;  %v3119_v57 = vpop.permute.xlu1 %400 }
 0x1c4   : > { %2413 = vset.pattern.permute.xlu2 %v2926_v17  ;;  %2412 = vset.pattern.permute.xlu1 %v2961_v22 }
 0x1c5   : > { %1311 = vadd.xlane.f32.xlu0 %v1176_v60  ;;  %v3122_v60 = vpop.permute.xlu0 %897 }
 0x1c6   : > { %4167 = vst [vmem:[#allocation24_spill] sm:$0xff] %v3122_v60 }
 0x1cc   : > { %618 = vperm.xlu2 %2413, %v2869_v6   ;;  %612 = vperm.xlu1 %2412, %v2869_v6   ;;  %v1146_v6 = vrot.slane %v3057_v47, 1 }
 0x1cd   : > { %1317 = vadd.xlane.f32.xlu0 %v1179_v0  ;;  %v3127_v0 = vpop.permute.xlu2 %424 }
 0x1ce   : > { %v3112_v44 = vperm.slane %v1146_v6, 0  ;;  %v3135_v6 = vpop.permute.xlu0 %249 }
 0x1d0   : > { %v1185_v41 = vsel %vm1033_vm5, %v3112_v44, 0.0  ;;  %v1188_v59 = vsel %vm1036_vm6, %v3112_v44, 0.0  ;;  %v1191_v63 = vsel %vm1039_vm7, %v3112_v44, 0.0  ;;  %v1194_v4 = vsel %vm1042_vm8, %v3112_v44, 0.0 }
 0x1d1   : > { %v1197_v34 = vsel %vm1045_vm9, %v3112_v44, 0.0  ;;  %vm1090_vm8 = vcmp.eq.s32.totalorder %v3013_v32, %v3060_v48 }
 0x1d4   : > { %2416 = vset.pattern.permute.xlu2 %v2935_v18  ;;  %2415 = vset.pattern.permute.xlu1 %v2849_v1 }
 0x1d5   : > { %1323 = vadd.xlane.f32.xlu0 %v1182_v24  ;;  %v3129_v24 = vpop.permute.xlu1 %418 }
 0x1d6   : > { %v3145_v46 = vpop.permute.xlu0 %443 }
 0x1dc   : > { %637 = vperm.xlu2 %2416, %v2923_v16   ;;  %631 = vperm.xlu1 %2415, %v2923_v16  }
 0x1dd   : > { %1329 = vadd.xlane.f32.xlu0 %v1185_v41  ;;  %v3137_v41 = vpop.permute.xlu2 %437  ;;  %v431_v60 = vpop.permute.xlu1 %430 }
 0x1de   : > { %v3153_v33 = vpop.permute.xlu0 %928  ;;  %vm1048_vm10 = vcmp.eq.s32.totalorder %v431_v60, %v3060_v48 }
 0x1df   : > { %v1200_v42 = vsel %vm1048_vm10, %v3112_v44, 0.0 }
 0x1e4   : > { %2418 = vset.pattern.permute.xlu2 %v2875_v8  ;;  %2417 = vset.pattern.permute.xlu1 %v2856_v3 }
 0x1e5   : > { %1335 = vadd.xlane.f32.xlu0 %v1188_v59  ;;  %v3143_v59 = vpop.permute.xlu2 %455  ;;  %v450_v56 = vpop.permute.xlu1 %449 }
 0x1e6   : > { %vm1051_vm11 = vcmp.eq.s32.totalorder %v450_v56, %v3060_v48  ;;  %v3165_v27 = vpop.permute.xlu0 %473 }
 0x1e7   : > { %4169 = vst [vmem:[#allocation26_spill] sm:$0xff] %v3165_v27 }
 0x1ec   : > { %649 = vperm.xlu2 %2418, %v2923_v16   ;;  %643 = vperm.xlu1 %2417, %v2923_v16  }
 0x1ed   : > { %1341 = vadd.xlane.f32.xlu0 %v1191_v63  ;;  %v468_v25 = vpop.permute.xlu2 %467  ;;  %v3151_v63 = vpop.permute.xlu1 %461 }
 0x1ee   : > { %vm1054_vm12 = vcmp.eq.s32.totalorder %v468_v25, %v3060_v48 }
 0x1f4   : > { %2421 = vset.pattern.permute.xlu2 %v2887_v10  ;;  %2420 = vset.pattern.permute.xlu1 %v2872_v7 }
 0x1f5   : > { %1347 = vadd.xlane.f32.xlu0 %v1194_v4  ;;  %v486_v4 = vpop.permute.xlu2 %485  ;;  %v3160_v30 = vpop.permute.xlu1 %479 }
 0x1f6   : > { %4168 = vst [vmem:[#allocation25_spill] sm:$0xff] %v3160_v30  ;;  %v3175_v30 = vpop.permute.xlu0 %958  ;;  %vm1057_vm13 = vcmp.eq.s32.totalorder %v486_v4, %v3060_v48 }
 0x1f7   : > { %4172 = vst [vmem:[#allocation29_spill] sm:$0xff] %v3175_v30 }
 0x1fc   : > { %667 = vperm.xlu2 %2421, %v2923_v16   ;;  %661 = vperm.xlu1 %2420, %v2923_v16  }
 0x1fd   : > { %1353 = vadd.xlane.f32.xlu0 %v1197_v34  ;;  %v3163_v34 = vperm.slane %v1147_v31, 0  ;;  %v3170_v26 = vpop.permute.xlu2 %497 }
 0x1fe   : > { %4170 = vst [vmem:[#allocation27_spill] sm:$0xff] %v3170_v26  ;;  %v504_v26 = vpop.permute.xlu0 %503 }
 0x1ff   : > { %v1203_v60 = vsel %vm1051_vm11, %v3163_v34, 0.0  ;;  %v1206_v31 = vsel %vm1054_vm12, %v3163_v34, 0.0  ;;  %v1209_v25 = vsel %vm1057_vm13, %v3163_v34, 0.0  ;;  %vm1060_vm14 = vcmp.eq.s32.totalorder %v504_v26, %v3060_v48 }
 0x200   : > { %v1148_v26 = vrot.slane %v3057_v47, 3  ;;  %vm1105_vm13 = vcmp.eq.s32.totalorder %v3034_v38, %v3060_v48 }
 0x204   : > { %2423 = vset.pattern.permute.xlu2 %v2953_v21  ;;  %2422 = vset.pattern.permute.xlu1 %v2884_v9 }
 0x205   : > { %1359 = vadd.xlane.f32.xlu0 %v1200_v42  ;;  %v3172_v42 = vpop.permute.xlu1 %491  ;;  %v3180_v56 = vpop.permute.xlu2 %515 }
 0x206   : > { %4171 = vst [vmem:[#allocation28_spill] sm:$0xff] %v3172_v42 }
 0x207   : > { %4173 = vst [vmem:[#allocation30_spill] sm:$0xff] %v3180_v56  ;;  %v1212_v56 = vsel %vm1060_vm14, %v3163_v34, 0.0 }
 0x20c   : > { %679 = vperm.xlu2 %2423, %v2923_v16   ;;  %673 = vperm.xlu1 %2422, %v2923_v16  }
 0x20d   : > { %1365 = vadd.xlane.f32.xlu0 %v1203_v60  ;;  %v3182_v27 = vpop.permute.xlu1 %509  ;;  %v3188_v60 = vpop.permute.xlu2 %527 }
 0x20e   : > { %4174 = vst [vmem:[#allocation31_spill] sm:$0xff] %v3182_v27 }
 0x20f   : > { %4175 = vst [vmem:[#allocation32_spill] sm:$0xff] %v3188_v60 }
 0x214   : > { %2426 = vset.pattern.permute.xlu2 %v2914_v15  ;;  %2425 = vset.pattern.permute.xlu1 %v2893_v11 }
 0x215   : > { %1371 = vadd.xlane.f32.xlu0 %v1206_v31  ;;  %v522_v30 = vpop.permute.xlu1 %521  ;;  %v3194_v4 = vpop.permute.xlu2 %546 }
 0x216   : > { %4176 = vst [vmem:[#allocation33_spill] sm:$0xff] %v3194_v4  ;;  %vm1063_vm15 = vcmp.eq.s32.totalorder %v522_v30, %v3060_v48 }
 0x21c   : > { %697 = vperm.xlu2 %2426, %v2923_v16   ;;  %691 = vperm.xlu1 %2425, %v2923_v16  }
 0x21d   : > { %1377 = vadd.xlane.f32.xlu0 %v1209_v25  ;;  %v541_v31 = vpop.permute.xlu1 %540  ;;  %v1215_v25 = vsel %vm1063_vm15, %v3163_v34, 0.0  ;;  %v559_v60 = vpop.permute.xlu2 %558 }
 0x21e   : > { %vm1066_vm0 = vcmp.eq.s32.totalorder %v541_v31, %v3060_v48  ;;  %vm1069_vm1 = vcmp.eq.s32.totalorder %v559_v60, %v3060_v48 }
 0x224   : > { %2428 = vset.pattern.permute.xlu2 %v2961_v22  ;;  %2427 = vset.pattern.permute.xlu1 %v2911_v14 }
 0x225   : > { %1383 = vadd.xlane.f32.xlu0 %v1212_v56  ;;  %v3201_v27 = vpop.permute.xlu1 %552  ;;  %v3204_v56 = vperm.slane %v1148_v26, 0  ;;  %v577_v4 = vpop.permute.xlu2 %576 }
 0x226   : > { %vm1072_vm2 = vcmp.eq.s32.totalorder %v577_v4, %v3060_v48 }
 0x227   : > { %v1218_v30 = vsel %vm1066_vm0, %v3204_v56, 0.0  ;;  %v1221_v31 = vsel %vm1069_vm1, %v3204_v56, 0.0 }
 0x22c   : > { %709 = vperm.xlu2 %2428, %v2923_v16   ;;  %703 = vperm.xlu1 %2427, %v2923_v16  }
 0x22d   : > { %1389 = vadd.xlane.f32.xlu0 %v1215_v25  ;;  %v3209_v42 = vpop.permute.xlu1 %570  ;;  %v3215_v25 = vpop.permute.xlu2 %588 }
 0x22e   : > { %4177 = vst [vmem:[#allocation34_spill] sm:$0xff] %v3209_v42 }
 0x234   : > { %2431 = vset.pattern.permute.xlu2 %v2849_v1  ;;  %2430 = vset.pattern.permute.xlu1 %v2905_v13 }
 0x235   : > { %1395 = vadd.xlane.f32.xlu0 %v1218_v30  ;;  %v3217_v26 = vpop.permute.xlu1 %582  ;;  %v1224_v30 = vsel %vm1072_vm2, %v3204_v56, 0.0  ;;  %v3223_v60 = vpop.permute.xlu2 %606  ;;  %vm1120_vm2 = vcmp.eq.s32.totalorder %v3102_v19, %v3060_v48 }
 0x236   : > { %4178 = vst [vmem:[#allocation35_spill] sm:$0xff] %v3223_v60 }
 0x23c   : > { %728 = vperm.xlu2 %2431, %v2947_v20   ;;  %721 = vperm.xlu1 %2430, %v2923_v16   ;;  %v1227_v16 = vsel %vm1075_vm3, %v3204_v56, 0.0 }
 0x23d   : > { %1401 = vadd.xlane.f32.xlu0 %v1221_v31  ;;  %v3225_v42 = vpop.permute.xlu1 %600  ;;  %v3232_v4 = vpop.permute.xlu2 %618 }
 0x23e   : > { %4179 = vst [vmem:[#allocation36_spill] sm:$0xff] %v3225_v42 }
 0x23f   : > { %4180 = vst [vmem:[#allocation37_spill] sm:$0xff] %v3232_v4 }
 0x244   : > { %2433 = vset.pattern.permute.xlu2 %v2856_v3  ;;  %2432 = vset.pattern.permute.xlu1 %v2935_v18 }
 0x245   : > { %1407 = vadd.xlane.f32.xlu0 %v1224_v30  ;;  %v613_v31 = vpop.permute.xlu1 %612  ;;  %v3239_v60 = vpop.permute.xlu2 %637 }
 0x246   : > { %vm1078_vm4 = vcmp.eq.s32.totalorder %v613_v31, %v3060_v48 }
 0x247   : > { %v1230_v30 = vsel %vm1078_vm4, %v3204_v56, 0.0  ;;  %vm1130_vm4 = vcmp.eq.s32.totalorder %v3153_v33, %v3060_v48 }
 0x24c   : > { %740 = vperm.xlu2 %2433, %v2947_v20   ;;  %734 = vperm.xlu1 %2432, %v2947_v20  }
 0x24d   : > { %1413 = vadd.xlane.f32.xlu0 %v1227_v16  ;;  %v3242_v16 = vperm.slane %v1149_v28, 0  ;;  %v650_v4 = vpop.permute.xlu2 %649 }
 0x24e   : > { %v632_v42 = vpop.permute.xlu1 %631  ;;  %vm1084_vm6 = vcmp.eq.s32.totalorder %v650_v4, %v3060_v48 }
 0x24f   : > { %vm1081_vm5 = vcmp.eq.s32.totalorder %v632_v42, %v3060_v48 }
 0x250   : > { %v1233_v31 = vsel %vm1081_vm5, %v3242_v16, 0.0  ;;  %vm1018_vm5 = vcmp.eq.s32.totalorder %v3135_v6, %v3060_v48 }
 0x254   : > { %2437 = vset.pattern.permute.xlu2 %v2872_v7  ;;  %2436 = vset.pattern.permute.xlu1 %v2853_v2 }
 0x255   : > { %1419 = vadd.xlane.f32.xlu0 %v1230_v30  ;;  %v1236_v30 = vsel %vm1084_vm6, %v3242_v16, 0.0  ;;  %vm1019_vm6 = vcmp.eq.s32.totalorder %v3032_v37, %v3060_v48 }
 0x256   : > { %v668_v42 = vpop.permute.xlu2 %667 }
 0x257   : > { %vm1087_vm7 = vcmp.eq.s32.totalorder %v668_v42, %v3060_v48 }
 0x258   : > { %v1239_v28 = vsel %vm1087_vm7, %v3242_v16, 0.0  ;;  %vm1020_vm7 = vcmp.eq.s32.totalorder %v3041_v40, %v3060_v48 }
 0x259   : > { %v1172_v37 = vsel %vm1020_vm7, %v3069_v51, 0.0 }
 0x25c   : > { %758 = vperm.xlu2 %2437, %v2947_v20   ;;  %752 = vperm.xlu1 %2436, %v2947_v20  }
 0x25d   : > { %1425 = vadd.xlane.f32.xlu0 %v1233_v31  ;;  %v1242_v31 = vsel %vm1090_vm8, %v3242_v16, 0.0  ;;  %vm1022_vm8 = vcmp.eq.s32.totalorder %v3039_v39, %v3060_v48 }
 0x25e   : > { %v3261_v4 = vpop.permute.xlu1 %643 }
 0x25f   : > { %4181 = vst [vmem:[#allocation38_spill] sm:$0xff] %v3261_v4 }
 0x264   : > { %2439 = vset.pattern.permute.xlu2 %v2884_v9  ;;  %2438 = vset.pattern.permute.xlu1 %v2887_v10 }
 0x265   : > { %1431 = vadd.xlane.f32.xlu0 %v1236_v30 }
 0x26c   : > { %770 = vperm.xlu2 %2439, %v2947_v20   ;;  %764 = vperm.xlu1 %2438, %v2947_v20  }
 0x26d   : > { %1437 = vadd.xlane.f32.xlu0 %v1239_v28  ;;  %v3272_v28 = vpop.permute.xlu2 %679 }
 0x26e   : > { %v3266_v30 = vpop.permute.xlu1 %661  ;;  %4184 = vst [vmem:[#allocation41_spill] sm:$0xff] %v3272_v28 }
 0x26f   : > { %4182 = vst [vmem:[#allocation39_spill] sm:$0xff] %v3266_v30 }
 0x274   : > { %2442 = vset.pattern.permute.xlu2 %v2893_v11  ;;  %2441 = vset.pattern.permute.xlu1 %v2899_v12 }
 0x275   : > { %1443 = vadd.xlane.f32.xlu0 %v1242_v31 }
 0x276   : > { %v3278_v31 = vpop.permute.xlu2 %697 }
 0x277   : > { %4185 = vst [vmem:[#allocation42_spill] sm:$0xff] %v3278_v31 }
 0x27c   : > { %788 = vperm.xlu2 %2442, %v2947_v20   ;;  %782 = vperm.xlu1 %2441, %v2947_v20  }
 0x27e   : > { %v3270_v42 = vpop.permute.xlu1 %673 }
 0x27f   : > { %4183 = vst [vmem:[#allocation40_spill] sm:$0xff] %v3270_v42 }
 0x284   : > { %2444 = vset.pattern.permute.xlu2 %v2911_v14  ;;  %2443 = vset.pattern.permute.xlu1 %v2914_v15 }
 0x286   : > { %v3284_v42 = vpop.permute.xlu2 %709 }
 0x287   : > { %4186 = vst [vmem:[#allocation43_spill] sm:$0xff] %v3284_v42 }
 0x28c   : > { %800 = vperm.xlu2 %2444, %v2947_v20   ;;  %794 = vperm.xlu1 %2443, %v2947_v20  }
 0x28e   : > { %v3276_v32 = vpop.permute.xlu1 %691 }
 0x294   : > { %2447 = vset.pattern.permute.xlu2 %v2905_v13  ;;  %2446 = vset.pattern.permute.xlu1 %v2926_v17 }
 0x296   : > { %v3288_v28 = vpop.permute.xlu2 %728 }
 0x297   : > { %4187 = vst [vmem:[#allocation44_spill] sm:$0xff] %v3288_v28 }
 0x29c   : > { %818 = vperm.xlu2 %2447, %v2947_v20   ;;  %812 = vperm.xlu1 %2446, %v2947_v20  }
 0x29e   : > { %v704_v30 = vpop.permute.xlu1 %703 }
 0x29f   : > { %vm1093_vm9 = vcmp.eq.s32.totalorder %v704_v30, %v3060_v48 }
 0x2a0   : > { %v1245_v4 = vsel %vm1093_vm9, %v3242_v16, 0.0 }
 0x2a1   : > { %1449 = vadd.xlane.f32.xlu0 %v1245_v4  ;;  %v1150_v4 = vrot.slane %v3057_v47, 5 }
 0x2a4   : > { %2449 = vset.pattern.permute.xlu2 %v2935_v18  ;;  %2448 = vset.pattern.permute.xlu1 %v2849_v1  ;;  %v3298_v18 = vperm.slane %v1150_v4, 0 }
 0x2a6   : > { %v741_v30 = vpop.permute.xlu2 %740 }
 0x2a7   : > { %vm1099_vm11 = vcmp.eq.s32.totalorder %v741_v30, %v3060_v48 }
 0x2a8   : > { %v1251_v28 = vsel %vm1099_vm11, %v3298_v18, 0.0  ;;  %vm1025_vm11 = vcmp.eq.s32.totalorder %v3027_v35, %v3060_v48 }
 0x2ac   : > { %831 = vperm.xlu2 %2449, %v2974_v23   ;;  %825 = vperm.xlu1 %2448, %v2974_v23  }
 0x2ae   : > { %v722_v31 = vpop.permute.xlu1 %721 }
 0x2af   : > { %vm1096_vm10 = vcmp.eq.s32.totalorder %v722_v31, %v3060_v48 }
 0x2b0   : > { %v1248_v20 = vsel %vm1096_vm10, %v3242_v16, 0.0  ;;  %vm1023_vm10 = vcmp.eq.s32.totalorder %v3045_v43, %v3060_v48 }
 0x2b1   : > { %1455 = vadd.xlane.f32.xlu0 %v1248_v20  ;;  %v1175_v40 = vsel %vm1023_vm10, %v3069_v51, 0.0 }
 0x2b4   : > { %2452 = vset.pattern.permute.xlu2 %v2853_v2  ;;  %2451 = vset.pattern.permute.xlu1 %v2875_v8 }
 0x2b6   : > { %v759_v42 = vpop.permute.xlu2 %758 }
 0x2b7   : > { %vm1102_vm12 = vcmp.eq.s32.totalorder %v759_v42, %v3060_v48  ;;  %v1257_v42 = vsel %vm1105_vm13, %v3298_v18, 0.0  ;;  %vm1028_vm13 = vcmp.eq.s32.totalorder %v3064_v50, %v3060_v48  ;;  %v3450_v50 = vpop.permute.xlu0 %988 }
 0x2b8   : > { %v1254_v31 = vsel %vm1102_vm12, %v3298_v18, 0.0  ;;  %vm1026_vm12 = vcmp.eq.s32.totalorder %v3049_v45, %v3060_v48  ;;  %v1180_v35 = vsel %vm1028_vm13, %v3069_v51, 0.0  ;;  %vm1044_vm13 = vcmp.eq.s32.totalorder %v3117_v53, %v3060_v48 }
 0x2b9   : > { %1461 = vadd.xlane.f32.xlu0 %v1251_v28  ;;  %v1178_v43 = vsel %vm1026_vm12, %v3069_v51, 0.0  ;;  %vm1043_vm12 = vcmp.eq.s32.totalorder %v3119_v57, %v3060_v48 }
 0x2bc   : > { %849 = vperm.xlu2 %2452, %v2974_v23   ;;  %843 = vperm.xlu1 %2451, %v2974_v23  }
 0x2c1   : > { %1467 = vadd.xlane.f32.xlu0 %v1254_v31 }
 0x2c4   : > { %2454 = vset.pattern.permute.xlu2 %v2887_v10  ;;  %2453 = vset.pattern.permute.xlu1 %v2872_v7  ;;  %v3316_v10 = vpop.permute.xlu1 %734 }
 0x2c6   : > { %v3326_v20 = vpop.permute.xlu2 %770 }
 0x2c7   : > { %4188 = vst [vmem:[#allocation45_spill] sm:$0xff] %v3326_v20 }
 0x2c9   : > { %1473 = vadd.xlane.f32.xlu0 %v1257_v42 }
 0x2cc   : > { %861 = vperm.xlu2 %2454, %v2974_v23   ;;  %855 = vperm.xlu1 %2453, %v2974_v23  }
 0x2ce   : > { %v3320_v28 = vpop.permute.xlu1 %752 }
 0x2d4   : > { %2457 = vset.pattern.permute.xlu2 %v2899_v12  ;;  %2456 = vset.pattern.permute.xlu1 %v2953_v21 }
 0x2d6   : > { %v3332_v30 = vpop.permute.xlu2 %788 }
 0x2d7   : > { %4190 = vst [vmem:[#allocation47_spill] sm:$0xff] %v3332_v30 }
 0x2dc   : > { %879 = vperm.xlu2 %2457, %v2974_v23   ;;  %873 = vperm.xlu1 %2456, %v2974_v23  }
 0x2de   : > { %v3324_v38 = vpop.permute.xlu1 %764 }
 0x2e4   : > { %2459 = vset.pattern.permute.xlu2 %v2914_v15  ;;  %2458 = vset.pattern.permute.xlu1 %v2893_v11 }
 0x2e6   : > { %v3338_v42 = vpop.permute.xlu2 %800 }
 0x2e7   : > { %4191 = vst [vmem:[#allocation48_spill] sm:$0xff] %v3338_v42 }
 0x2ec   : > { %891 = vperm.xlu2 %2459, %v2974_v23   ;;  %885 = vperm.xlu1 %2458, %v2974_v23  }
 0x2ee   : > { %v3330_v4 = vpop.permute.xlu1 %782 }
 0x2ef   : > { %4189 = vst [vmem:[#allocation46_spill] sm:$0xff] %v3330_v4 }
 0x2f4   : > { %2462 = vset.pattern.permute.xlu2 %v2926_v17  ;;  %2461 = vset.pattern.permute.xlu1 %v2961_v22 }
 0x2f6   : > { %v3342_v20 = vpop.permute.xlu2 %818 }
 0x2fc   : > { %909 = vperm.xlu2 %2462, %v2974_v23   ;;  %903 = vperm.xlu1 %2461, %v2974_v23  }
 0x2fe   : > { %v795_v15 = vpop.permute.xlu1 %794 }
 0x2ff   : > { %vm1108_vm14 = vcmp.eq.s32.totalorder %v795_v15, %v3060_v48  ;;  %v1151_v15 = vrot.slane %v3057_v47, 6 }
 0x300   : > { %v1260_v31 = vsel %vm1108_vm14, %v3298_v18, 0.0 }
 0x301   : > { %1479 = vadd.xlane.f32.xlu0 %v1260_v31  ;;  %v3349_v42 = vperm.slane %v1151_v15, 0 }
 0x304   : > { %2464 = vset.pattern.permute.xlu2 %v2849_v1  ;;  %2463 = vset.pattern.permute.xlu1 %v2905_v13 }
 0x306   : > { %v832_v31 = vpop.permute.xlu2 %831 }
 0x307   : > { %vm1114_vm0 = vcmp.eq.s32.totalorder %v832_v31, %v3060_v48 }
 0x308   : > { %v1266_v1 = vsel %vm1114_vm0, %v3349_v42, 0.0  ;;  %vm1031_vm0 = vcmp.eq.s32.totalorder %v3078_v55, %v3060_v48  ;;  %v3461_v55 = vpop.xlane.xlu0 %1297 }
 0x30c   : > { %922 = vperm.xlu2 %2464, %v3003_v29   ;;  %915 = vperm.xlu1 %2463, %v2974_v23  }
 0x30e   : > { %v813_v30 = vpop.permute.xlu1 %812 }
 0x30f   : > { %vm1111_vm15 = vcmp.eq.s32.totalorder %v813_v30, %v3060_v48 }
 0x310   : > { %v1263_v4 = vsel %vm1111_vm15, %v3298_v18, 0.0  ;;  %vm1029_vm15 = vcmp.eq.s32.totalorder %v3062_v49, %v3060_v48 }
 0x311   : > { %1485 = vadd.xlane.f32.xlu0 %v1263_v4 }
 0x314   : > { %2467 = vset.pattern.permute.xlu2 %v2875_v8  ;;  %2466 = vset.pattern.permute.xlu1 %v2856_v3  ;;  %v1272_v3 = vsel %vm1120_vm2, %v3349_v42, 0.0  ;;  %vm1032_vm2 = vcmp.eq.s32.totalorder %v3076_v54, %v3060_v48 }
 0x315   : > { %v1184_v49 = vsel %vm1032_vm2, %v3069_v51, 0.0  ;;  %vm1052_vm2 = vcmp.eq.s32.totalorder %v3143_v59, %v3060_v48 }
 0x316   : > { %v850_v23 = vpop.permute.xlu2 %849 }
 0x317   : > { %vm1117_vm1 = vcmp.eq.s32.totalorder %v850_v23, %v3060_v48  ;;  %v1174_v23 = vsel %vm1022_vm8, %v3069_v51, 0.0  ;;  %vm1038_vm8 = vcmp.eq.s32.totalorder %v3100_v5, %v3060_v48  ;;  %v1195_v5 = vsel %vm1043_vm12, %v3112_v44, 0.0 }
 0x318   : > { %v1269_v4 = vsel %vm1117_vm1, %v3349_v42, 0.0  ;;  %vm1817_vm12 = vcmask 195712  }
 0x319   : > { %1491 = vadd.xlane.f32.xlu0 %v1266_v1 }
 0x31c   : > { %940 = vperm.xlu2 %2467, %v3003_v29   ;;  %934 = vperm.xlu1 %2466, %v3003_v29  }
 0x321   : > { %1497 = vadd.xlane.f32.xlu0 %v1269_v4 }
 0x324   : > { %2469 = vset.pattern.permute.xlu2 %v2872_v7  ;;  %2468 = vset.pattern.permute.xlu1 %v2853_v2  ;;  %v3370_v7 = vpop.permute.xlu1 %825 }
 0x329   : > { %1503 = vadd.xlane.f32.xlu0 %v1272_v3 }
 0x32c   : > { %952 = vperm.xlu2 %2469, %v3003_v29   ;;  %946 = vperm.xlu1 %2468, %v3003_v29  }
 0x32e   : > { %v3374_v2 = vpop.permute.xlu1 %843 }
 0x334   : > { %2472 = vset.pattern.permute.xlu2 %v2953_v21  ;;  %2471 = vset.pattern.permute.xlu1 %v2884_v9 }
 0x33c   : > { %970 = vperm.xlu2 %2472, %v3003_v29   ;;  %964 = vperm.xlu1 %2471, %v3003_v29  }
 0x33e   : > { %v3378_v8 = vpop.permute.xlu1 %855 }
 0x344   : > { %2474 = vset.pattern.permute.xlu2 %v2893_v11  ;;  %2473 = vset.pattern.permute.xlu1 %v2899_v12  ;;  %v1152_v12 = vrot.slane %v3057_v47, 7  ;;  %v3398_v47 = vpop.permute.xlu2 %861 }
 0x34c   : > { %982 = vperm.xlu2 %2474, %v3003_v29   ;;  %976 = vperm.xlu1 %2473, %v3003_v29   ;;  %v3400_v19 = vpop.permute.xlu2 %879 }
 0x34e   : > { %v3382_v9 = vpop.permute.xlu1 %873 }
 0x354   : > { %2476 = vset.pattern.permute.xlu2 %v2961_v22  ;;  %2475 = vset.pattern.permute.xlu1 %v2911_v14  ;;  %v3391_v22 = vperm.slane %v1152_v12, 0  ;;  %v3402_v30 = vpop.permute.xlu2 %891 }
 0x356   : > { %v1282_v14 = vsel %vm1130_vm4, %v3391_v22, 0.0 }
 0x35c   : > { %1000 = vperm.xlu2 %2476, %v3003_v29   ;;  %994 = vperm.xlu1 %2475, %v3003_v29   ;;  %v3404_v15 = vpop.permute.xlu2 %909 }
 0x35e   : > { %v886_v11 = vpop.permute.xlu1 %885 }
 0x35f   : > { %vm1123_vm3 = vcmp.eq.s32.totalorder %v886_v11, %v3060_v48  ;;  %v1177_v11 = vsel %vm1025_vm11, %v3069_v51, 0.0  ;;  %vm1041_vm11 = vcmp.eq.s32.totalorder %v3109_v36, %v3060_v48  ;;  %v1196_v36 = vsel %vm1044_vm13, %v3112_v44, 0.0 }
 0x360   : > { %v1275_v21 = vsel %vm1123_vm3, %v3349_v42, 0.0  ;;  %vm1034_vm3 = vcmp.eq.s32.totalorder %v3086_v58, %v3060_v48  ;;  %vm1821_vm13 = vcmask 261312  }
 0x361   : > { %1509 = vadd.xlane.f32.xlu0 %v1275_v21 }
 0x364   : > { %2478 = vset.pattern.permute.xlu2 %v2905_v13  ;;  %2477 = vset.pattern.permute.xlu1 %v2926_v17  ;;  %v1170_v17 = vsel %vm1018_vm5, %v3069_v51, 0.0  ;;  %vm1035_vm5 = vcmp.eq.s32.totalorder %v3071_v52, %v3060_v48 }
 0x366   : > { %v3412_v13 = vpop.permute.xlu2 %922 }
 0x369   : > { %1523 = vadd.xlane.f32.xlu0 %v1282_v14 }
 0x36c   : > { %1012 = vperm.xlu2 %2478, %v3003_v29   ;;  %1006 = vperm.xlu1 %2477, %v3003_v29   ;;  %v1171_v29 = vsel %vm1019_vm6, %v3069_v51, 0.0  ;;  %vm1037_vm6 = vcmp.eq.s32.totalorder %v3094_v62, %v3060_v48  ;;  %v1190_v62 = vsel %vm1038_vm8, %v3112_v44, 0.0 }
 0x36d   : > { %v1189_v58 = vsel %vm1037_vm6, %v3112_v44, 0.0 }
 0x36e   : > { %v904_v33 = vpop.permute.xlu1 %903 }
 0x36f   : > { %vm1126_vm4 = vcmp.eq.s32.totalorder %v904_v33, %v3060_v48  ;;  %v3473_v33 = vpop.xlane.xlu0 %1305 }
 0x376   : > { %v3422_v6 = vpop.permute.xlu2 %940 }
 0x37e   : > { %v3406_v31 = vpop.permute.xlu1 %915 }
 0x386   : > { %v3432_v39 = vpop.permute.xlu2 %952 }
 0x38e   : > { %v3416_v1 = vpop.permute.xlu1 %934 }
 0x395   : > { %1301 = vadd.xlane.f32.xlu2 %v1171_v29  ;;  %v1183_v29 = vsel %vm1031_vm0, %v3069_v51, 0.0  ;;  %vm1049_vm0 = vcmp.eq.s32.totalorder %v3137_v41, %v3060_v48 }
 0x396   : > { %1299 = vadd.xlane.f32.xlu1 %v1170_v17  ;;  %v3440_v12 = vpop.permute.xlu2 %970  ;;  %v1181_v17 = vsel %vm1029_vm15, %v3069_v51, 0.0  ;;  %v1187_v51 = vsel %vm1035_vm5, %v3112_v44, 0.0  ;;  %vm1047_vm15 = vcmp.eq.s32.totalorder %v3127_v0, %v3060_v48  ;;  %v1204_v0 = vsel %vm1052_vm2, %v3163_v34, 0.0 }
 0x397   : > { %v1199_v57 = vsel %vm1047_vm15, %v3112_v44, 0.0  ;;  %vm1825_vm15 = vcmask 326912   ;;  %vm1833_vm2 = vcmask 458112  }
 0x39d   : > { %1303 = vadd.xlane.f32.xlu2 %v1172_v37 }
 0x39e   : > { %1307 = vadd.xlane.f32.xlu1 %v1174_v23  ;;  %v947_v4 = vpop.permute.xlu1 %946  ;;  %v1186_v23 = vsel %vm1034_vm3, %v3112_v44, 0.0  ;;  %vm1053_vm3 = vcmp.eq.s32.totalorder %v3151_v63, %v3060_v48  ;;  %v4194_v63 = vld [vmem:[#allocation28_spill] sm:$0xff] }
 0x39f   : > { %vm1133_vm9 = vcmp.eq.s32.totalorder %v947_v4, %v3060_v48  ;;  %v1278_v4 = vsel %vm1126_vm4, %v3349_v42, 0.0  ;;  %vm1058_vm6 = vcmp.eq.s32.totalorder %v4194_v63, %v3060_v48  ;;  %v3571_v63 = vadd.s32 4294967256, %v3060_v48 }
 0x3a0   : > { %v1285_v3 = vsel %vm1133_vm9, %v3391_v22, 0.0  ;;  %vm1040_vm9 = vcmp.eq.s32.totalorder %v3092_v61, %v3060_v48  ;;  %v1193_v61 = vsel %vm1041_vm11, %v3112_v44, 0.0 }
 0x3a1   : > { %1529 = vadd.xlane.f32.xlu0 %v1285_v3 }
 0x3a5   : > { %1309 = vadd.xlane.f32.xlu2 %v1175_v40  ;;  %v1192_v40 = vsel %vm1040_vm9, %v3112_v44, 0.0 }
 0x3a6   : > { %1313 = vadd.xlane.f32.xlu1 %v1177_v11  ;;  %v983_v45 = vpop.permute.xlu2 %982 }
 0x3a7   : > { %vm1139_vm1 = vcmp.eq.s32.totalorder %v983_v45, %v3060_v48  ;;  %v4192_v45 = vld [vmem:[#allocation26_spill] sm:$0xff] }
 0x3a8   : > { %v1291_v37 = vsel %vm1139_vm1, %v3391_v22, 0.0  ;;  %vm1050_vm1 = vcmp.eq.s32.totalorder %v3145_v46, %v3060_v48  ;;  %vm1055_vm4 = vcmp.eq.s32.totalorder %v4192_v45, %v3060_v48  ;;  %v1205_v46 = vsel %vm1053_vm3, %v3163_v34, 0.0 }
 0x3a9   : > { %v1207_v59 = vsel %vm1055_vm4, %v3163_v34, 0.0  ;;  %vm1068_vm3 = vcmp.eq.s32.totalorder %v3201_v27, %v3060_v48  ;;  %vm1837_vm4 = vcmask 523712  }
 0x3ad   : > { %1315 = vadd.xlane.f32.xlu2 %v1178_v43  ;;  %v3486_v43 = vpop.xlane.xlu0 %1311 }
 0x3ae   : > { %v965_v21 = vpop.permute.xlu1 %964  ;;  %1319 = vadd.xlane.f32.xlu1 %v1180_v35 }
 0x3af   : > { %vm1136_vm14 = vcmp.eq.s32.totalorder %v965_v21, %v3060_v48 }
 0x3b0   : > { %v1288_v14 = vsel %vm1136_vm14, %v3391_v22, 0.0  ;;  %vm1046_vm14 = vcmp.eq.s32.totalorder %v3129_v24, %v3060_v48  ;;  %v1201_v24 = vsel %vm1049_vm0, %v3163_v34, 0.0 }
 0x3b1   : > { %1535 = vadd.xlane.f32.xlu0 %v1288_v14  ;;  %v1198_v21 = vsel %vm1046_vm14, %v3112_v44, 0.0  ;;  %v1202_v14 = vsel %vm1050_vm1, %v3163_v34, 0.0  ;;  %vm1829_vm1 = vcmask 392512  }
 0x3b5   : > { %1321 = vadd.xlane.f32.xlu2 %v1181_v17  ;;  %v3496_v35 = vpop.xlane.xlu0 %1317  ;;  %v4193_v17 = vld [vmem:[#allocation25_spill] sm:$0xff] }
 0x3b6   : > { %1325 = vadd.xlane.f32.xlu1 %v1183_v29  ;;  %v1001_v54 = vpop.permute.xlu2 %1000  ;;  %vm1056_vm5 = vcmp.eq.s32.totalorder %v4193_v17, %v3060_v48  ;;  %v3565_v17 = vadd.s32 4294967264, %v3060_v48 }
 0x3b7   : > { %vm1142_vm7 = vcmp.eq.s32.totalorder %v1001_v54, %v3060_v48 }
 0x3b8   : > { %v1294_v3 = vsel %vm1142_vm7, %v3391_v22, 0.0 }
 0x3b9   : > { %1541 = vadd.xlane.f32.xlu0 %v1291_v37 }
 0x3bd   : > { %1327 = vadd.xlane.f32.xlu2 %v1184_v49  ;;  %v3505_v53 = vpop.xlane.xlu0 %1323  ;;  %v1208_v49 = vsel %vm1056_vm5, %v3163_v34, 0.0 }
 0x3be   : > { %1331 = vadd.xlane.f32.xlu1 %v1186_v23  ;;  %v3518_v44 = vpop.permute.xlu1 %976  ;;  %v1210_v23 = vsel %vm1058_vm6, %v3163_v34, 0.0  ;;  %vm4144_vm6 = vcmask 589312  }
 0x3c1   : > { %1515 = vadd.xlane.f32.xlu0 %v1278_v4  ;;  %v4195_v4 = vld [vmem:[#allocation27_spill] sm:$0xff] }
 0x3c2   : > { %vm1059_vm7 = vcmp.eq.s32.totalorder %v4195_v4, %v3060_v48 }
 0x3c5   : > { %1333 = vadd.xlane.f32.xlu2 %v1187_v51  ;;  %v3514_v41 = vpop.xlane.xlu0 %1329  ;;  %v4197_v51 = vld [vmem:[#allocation31_spill] sm:$0xff] }
 0x3c6   : > { %1337 = vadd.xlane.f32.xlu1 %v1189_v58  ;;  %v1013_v52 = vpop.permute.xlu2 %1012  ;;  %vm1061_vm8 = vcmp.eq.s32.totalorder %v4197_v51, %v3060_v48  ;;  %v4201_v51 = vld [vmem:[#allocation33_spill] sm:$0xff] }
 0x3c7   : > { %vm1144_vm10 = vcmp.eq.s32.totalorder %v1013_v52, %v3060_v48  ;;  %v1213_v52 = vsel %vm1061_vm8, %v3163_v34, 0.0  ;;  %vm1067_vm0 = vcmp.eq.s32.totalorder %v4201_v51, %v3060_v48 }
 0x3c8   : > { %v1296_v11 = vsel %vm1144_vm10, %v3391_v22, 0.0  ;;  %vm1813_vm10 = vcmask 130112  }
 0x3c9   : > { %1547 = vadd.xlane.f32.xlu0 %v1294_v3  ;;  %v1211_v3 = vsel %vm1059_vm7, %v3163_v34, 0.0  ;;  %vm4143_vm7 = vcmask 654912  }
 0x3cd   : > { %1339 = vadd.xlane.f32.xlu2 %v1190_v62  ;;  %v3526_v29 = vpop.xlane.xlu0 %1335  ;;  %v3545_v62 = vadd.s32 4294967288, %v3060_v48 }
 0x3ce   : > { %1343 = vadd.xlane.f32.xlu1 %v1192_v40  ;;  %v3528_v37 = vpop.permute.xlu1 %994 }
 0x3d1   : > { %1551 = vadd.xlane.f32.xlu0 %v1296_v11  ;;  %v4198_v11 = vld [vmem:[#allocation30_spill] sm:$0xff] }
 0x3d2   : > { %vm1062_vm9 = vcmp.eq.s32.totalorder %v4198_v11, %v3060_v48 }
 0x3d5   : > { %1345 = vadd.xlane.f32.xlu2 %v1193_v61  ;;  %v3540_v58 = vpop.xlane.xlu0 %1341  ;;  %v3550_v61 = vadd.s32 4294967280, %v3060_v48 }
 0x3d6   : > { %1349 = vadd.xlane.f32.xlu1 %v1195_v5 }
 0x3dd   : > { %1351 = vadd.xlane.f32.xlu2 %v1196_v36  ;;  %v4199_v36 = vld [vmem:[#allocation32_spill] sm:$0xff]  ;;  %v3560_v45 = vpop.xlane.xlu0 %1347 }
 0x3de   : > { %1355 = vadd.xlane.f32.xlu1 %v1198_v21  ;;  %v3536_v54 = vpop.permute.xlu1 %1006  ;;  %vm1064_vm11 = vcmp.eq.s32.totalorder %v4199_v36, %v3060_v48  ;;  %v1810_v21 = vperm.slane %v3461_v55, %v3060_v48  ;;  %v3568_v55 = vadd.s32 4294967272, %v3060_v48 }
 0x3df   : > { %4196 = vst [vmem:[#allocation26_spill] sm:$0xff] %v3536_v54  ;;  %v4208_v54 = vld [vmem:[#allocation38_spill] sm:$0xff] }
 0x3e5   : > { %1357 = vadd.xlane.f32.xlu2 %v1199_v57 }
 0x3e6   : > { %1361 = vadd.xlane.f32.xlu1 %v1201_v24 }
 0x3ed   : > { %1363 = vadd.xlane.f32.xlu2 %v1202_v14 }
 0x3ee   : > { %1367 = vadd.xlane.f32.xlu1 %v1204_v0  ;;  %v1214_v0 = vsel %vm1062_vm9, %v3163_v34, 0.0  ;;  %vm4141_vm9 = vcmask 720512  }
 0x3f5   : > { %1369 = vadd.xlane.f32.xlu2 %v1205_v46  ;;  %v1216_v46 = vsel %vm1064_vm11, %v3163_v34, 0.0  ;;  %vm1073_vm11 = vcmp.eq.s32.totalorder %v3217_v26, %v3060_v48  ;;  %v3635_v26 = vadd.s32 4294967200, %v3060_v48 }
 0x3f6   : > { %1373 = vadd.xlane.f32.xlu1 %v1207_v59 }
 0x3fd   : > { %1375 = vadd.xlane.f32.xlu2 %v1208_v49 }
 0x3fe   : > { %1379 = vadd.xlane.f32.xlu1 %v1210_v23  ;;  %v4200_v23 = vld [vmem:[#allocation16_spill] sm:$0xff] }
 0x3ff   : > { %vm1065_vm14 = vcmp.eq.s32.totalorder %v4200_v23, %v3060_v48 }
 0x405   : > { %1381 = vadd.xlane.f32.xlu2 %v1211_v3  ;;  %v1824_v3 = vperm.slane %v3473_v33, %v3565_v17  ;;  %v3590_v33 = vadd.s32 4294967248, %v3060_v48 }
 0x406   : > { %1385 = vadd.xlane.f32.xlu1 %v1213_v52 }
 0x408   : > { %v1302_v40 = vpop.xlane.xlu2 %1301 }
 0x409   : > { %v1300_v5 = vpop.xlane.xlu1 %1299  ;;  %v1816_v24 = vperm.slane %v1302_v40, %v3550_v61 }
 0x40a   : > { %v1812_v57 = vperm.slane %v1300_v5, %v3545_v62  ;;  %v1217_v5 = vsel %vm1065_vm14, %v3204_v56, 0.0  ;;  %vm4140_vm14 = vcmask 786112  }
 0x40c   : > { %v1814_v14 = vsel %vm1813_vm10, %v1812_v57, %v1810_v21  ;;  %v1219_v21 = vsel %vm1067_vm0, %v3204_v56, 0.0  ;;  %v3587_v57 = vadd.s32 4294967240, %v3060_v48  ;;  %vm1857_vm0 = vcmask 851712  }
 0x40d   : > { %1387 = vadd.xlane.f32.xlu2 %v1214_v0  ;;  %v1818_v59 = vsel %vm1817_vm12, %v1816_v24, %v1814_v14  ;;  %v3592_v24 = vpop.xlane.xlu0 %1353  ;;  %v3595_v14 = vadd.s32 4294967232, %v3060_v48 }
 0x40e   : > { %1391 = vadd.xlane.f32.xlu1 %v1216_v46  ;;  %v1836_v23 = vperm.slane %v3486_v43, %v3587_v57  ;;  %v3614_v43 = vadd.s32 4294967224, %v3060_v48 }
 0x410   : > { %v1304_v49 = vpop.xlane.xlu2 %1303 }
 0x411   : > { %v1820_v4 = vperm.slane %v1304_v49, %v3568_v55  ;;  %v1308_v34 = vpop.xlane.xlu1 %1307  ;;  %v4202_v49 = vld [vmem:[#allocation17_spill] sm:$0xff] }
 0x412   : > { %v1828_v52 = vperm.slane %v1308_v34, %v3571_v63  ;;  %vm1070_vm5 = vcmp.eq.s32.totalorder %v4202_v49, %v3060_v48 }
 0x413   : > { %v1822_v40 = vsel %vm1821_vm13, %v1820_v4, %v1818_v59 }
 0x414   : > { %v1826_v11 = vsel %vm1825_vm15, %v1824_v3, %v1822_v40  ;;  %v1220_v3 = vsel %vm1068_vm3, %v3204_v56, 0.0  ;;  %v3611_v40 = vadd.s32 4294967216, %v3060_v48  ;;  %vm1074_vm3 = vcmp.eq.s32.totalorder %v3215_v25, %v3060_v48 }
 0x415   : > { %v1830_v36 = vsel %vm1829_vm1, %v1828_v52, %v1826_v11  ;;  %1393 = vadd.xlane.f32.xlu2 %v1217_v5  ;;  %v1222_v52 = vsel %vm1070_vm5, %v3204_v56, 0.0  ;;  %v3617_v11 = vadd.s32 4294967208, %v3060_v48  ;;  %vm1861_vm5 = vcmask 917312  }
 0x416   : > { %1397 = vadd.xlane.f32.xlu1 %v1219_v21  ;;  %v3621_v21 = vpop.xlane.xlu0 %1359  ;;  %v1226_v25 = vsel %vm1074_vm3, %v3204_v56, 0.0 }
 0x418   : > { %v1310_v0 = vpop.xlane.xlu2 %1309 }
 0x419   : > { %v1832_v46 = vperm.slane %v1310_v0, %v3590_v33  ;;  %v1314_v59 = vpop.xlane.xlu1 %1313 }
 0x41a   : > { %v1840_v4 = vperm.slane %v1314_v59, %v3595_v14  ;;  %v1848_v59 = vperm.slane %v3496_v35, %v3611_v40  ;;  %v3638_v35 = vadd.s32 4294967192, %v3060_v48 }
 0x41b   : > { %v1834_v34 = vsel %vm1833_vm2, %v1832_v46, %v1830_v36  ;;  %v4203_v36 = vld [vmem:[#allocation34_spill] sm:$0xff] }
 0x41c   : > { %v1838_v51 = vsel %vm1837_vm4, %v1836_v23, %v1834_v34  ;;  %vm1071_vm8 = vcmp.eq.s32.totalorder %v4203_v36, %v3060_v48 }
 0x41d   : > { %v1842_v27 = vsel %vm4144_vm6, %v1840_v4, %v1838_v51  ;;  %1399 = vadd.xlane.f32.xlu2 %v1220_v3  ;;  %v1223_v34 = vsel %vm1071_vm8, %v3204_v56, 0.0  ;;  %v1225_v3 = vsel %vm1073_vm11, %v3204_v56, 0.0  ;;  %vm1865_vm11 = vcmask 982912  }
 0x41e   : > { %1403 = vadd.xlane.f32.xlu1 %v1222_v52  ;;  %v3641_v52 = vadd.s32 4294967184, %v3060_v48 }
 0x420   : > { %v1316_v5 = vpop.xlane.xlu2 %1315 }
 0x421   : > { %v1844_v0 = vperm.slane %v1316_v5, %v3614_v43  ;;  %v1320_v46 = vpop.xlane.xlu1 %1319 }
 0x422   : > { %v1852_v49 = vperm.slane %v1320_v46, %v3617_v11  ;;  %v1860_v46 = vperm.slane %v3505_v53, %v3638_v35 }
 0x423   : > { %v1846_v23 = vsel %vm4143_vm7, %v1844_v0, %v1842_v27  ;;  %v4204_v0 = vld [vmem:[#allocation36_spill] sm:$0xff] }
 0x424   : > { %v1850_v4 = vsel %vm4141_vm9, %v1848_v59, %v1846_v23  ;;  %vm1076_vm8 = vcmp.eq.s32.totalorder %v4204_v0, %v3060_v48  ;;  %v4206_v0 = vld [vmem:[#allocation37_spill] sm:$0xff] }
 0x425   : > { %v1854_v51 = vsel %vm4140_vm14, %v1852_v49, %v1850_v4  ;;  %1405 = vadd.xlane.f32.xlu2 %v1223_v34  ;;  %v3651_v49 = vpop.xlane.xlu0 %1365  ;;  %vm4142_vm14 = vcmask 1048512   ;;  %vm1079_vm3 = vcmp.eq.s32.totalorder %v4206_v0, %v3060_v48  ;;  %v4207_v0 = vld [vmem:[#allocation18_spill] sm:$0xff] }
 0x426   : > { %1409 = vadd.xlane.f32.xlu1 %v1225_v3  ;;  %v1228_v3 = vsel %vm1076_vm8, %v3204_v56, 0.0  ;;  %vm1080_vm8 = vcmp.eq.s32.totalorder %v4207_v0, %v3060_v48 }
 0x428   : > { %v1322_v27 = vpop.xlane.xlu2 %1321 }
 0x429   : > { %v1856_v5 = vperm.slane %v1322_v27, %v3635_v26  ;;  %v1326_v36 = vpop.xlane.xlu1 %1325  ;;  %v3659_v27 = vadd.s32 4294967176, %v3060_v48 }
 0x42a   : > { %v1864_v59 = vperm.slane %v1326_v36, %v3641_v52  ;;  %v4205_v36 = vld [vmem:[#allocation35_spill] sm:$0xff] }
 0x42b   : > { %v1858_v23 = vsel %vm1857_vm0, %v1856_v5, %v1854_v51  ;;  %vm1077_vm9 = vcmp.eq.s32.totalorder %v4205_v36, %v3060_v48 }
 0x42c   : > { %v1862_v4 = vsel %vm1861_vm5, %v1860_v46, %v1858_v23  ;;  %v1871_v46 = vperm.slane %v3514_v41, %v3060_v48 }
 0x42d   : > { %v1866_v34 = vsel %vm1865_vm11, %v1864_v59, %v1862_v4  ;;  %1411 = vadd.xlane.f32.xlu2 %v1226_v25  ;;  %v1229_v25 = vsel %vm1077_vm9, %v3204_v56, 0.0  ;;  %vm1083_vm9 = vcmp.eq.s32.totalorder %v4208_v54, %v3060_v48 }
 0x42e   : > { %1415 = vadd.xlane.f32.xlu1 %v1228_v3  ;;  %v3674_v3 = vpop.xlane.xlu0 %1371 }
 0x430   : > { %v1328_v53 = vpop.xlane.xlu2 %1327 }
 0x431   : > { %v1868_v51 = vperm.slane %v1328_v53, %v3659_v27  ;;  %v1332_v5 = vpop.xlane.xlu1 %1331  ;;  %v1231_v53 = vsel %vm1079_vm3, %v3204_v56, 0.0 }
 0x432   : > { %v1872_v59 = vperm.slane %v1332_v5, %v3545_v62 }
 0x433   : > { %v3670_v23 = vsel %vm4142_vm14, %v1868_v51, %v1866_v34  ;;  %vm1082_vm14 = vcmp.eq.s32.totalorder %v3239_v60, %v3060_v48  ;;  %v1876_v34 = vperm.slane %v3526_v29, %v3568_v55 }
 0x434   : > { %v1873_v4 = vsel %vm1813_vm10, %v1872_v59, %v1871_v46 }
 0x435   : > { %1417 = vadd.xlane.f32.xlu2 %v1229_v25  ;;  %v1232_v25 = vsel %vm1080_vm8, %v3204_v56, 0.0  ;;  %v1882_v56 = vperm.slane %v3540_v58, %v3590_v33 }
 0x436   : > { %1421 = vadd.xlane.f32.xlu1 %v1231_v53  ;;  %v3690_v0 = vpop.xlane.xlu0 %1377 }
 0x438   : > { %v1334_v36 = vpop.xlane.xlu2 %1333 }
 0x439   : > { %v1874_v41 = vperm.slane %v1334_v36, %v3550_v61  ;;  %v1338_v5 = vpop.xlane.xlu1 %1337  ;;  %v1234_v36 = vsel %vm1082_vm14, %v3242_v16, 0.0 }
 0x43a   : > { %v1878_v51 = vperm.slane %v1338_v5, %v3565_v17 }
 0x43b   : > { %v1875_v46 = vsel %vm1817_vm12, %v1874_v41, %v1873_v4  ;;  %v4209_v4 = vld [vmem:[#allocation19_spill] sm:$0xff] }
 0x43c   : > { %v1877_v59 = vsel %vm1821_vm13, %v1876_v34, %v1875_v46  ;;  %vm1085_vm3 = vcmp.eq.s32.totalorder %v4209_v4, %v3060_v48  ;;  %v1235_v46 = vsel %vm1083_vm9, %v3242_v16, 0.0  ;;  %vm4212_vm9 = vcmask 720512  }
 0x43d   : > { %v1879_v53 = vsel %vm1825_vm15, %v1878_v51, %v1877_v59  ;;  %1423 = vadd.xlane.f32.xlu2 %v1232_v25  ;;  %v1237_v54 = vsel %vm1085_vm3, %v3242_v16, 0.0 }
 0x43e   : > { %1427 = vadd.xlane.f32.xlu1 %v1234_v36  ;;  %v4210_v36 = vld [vmem:[#allocation39_spill] sm:$0xff] }
 0x43f   : > { %vm1086_vm14 = vcmp.eq.s32.totalorder %v4210_v36, %v3060_v48 }
 0x440   : > { %v1340_v60 = vpop.xlane.xlu2 %1339 }
 0x441   : > { %v1880_v29 = vperm.slane %v1340_v60, %v3571_v63  ;;  %v1344_v5 = vpop.xlane.xlu1 %1343  ;;  %v3707_v60 = vpop.xlane.xlu0 %1383 }
 0x442   : > { %v1884_v41 = vperm.slane %v1344_v5, %v3587_v57 }
 0x443   : > { %v1881_v34 = vsel %vm1829_vm1, %v1880_v29, %v1879_v53  ;;  %v1888_v53 = vperm.slane %v3560_v45, %v3614_v43  ;;  %v4211_v29 = vld [vmem:[#allocation40_spill] sm:$0xff]  ;;  %v4213_v45 = vld [vmem:[#allocation41_spill] sm:$0xff] }
 0x444   : > { %v1883_v51 = vsel %vm1833_vm2, %v1882_v56, %v1881_v34  ;;  %vm1088_vm8 = vcmp.eq.s32.totalorder %v4211_v29, %v3060_v48  ;;  %v1238_v34 = vsel %vm1086_vm14, %v3242_v16, 0.0  ;;  %vm1089_vm3 = vcmp.eq.s32.totalorder %v4213_v45, %v3060_v48 }
 0x445   : > { %v1885_v59 = vsel %vm1837_vm4, %v1884_v41, %v1883_v51  ;;  %1429 = vadd.xlane.f32.xlu2 %v1235_v46  ;;  %v1240_v46 = vsel %vm1088_vm8, %v3242_v16, 0.0  ;;  %vm4214_vm14 = vcmask 786112  }
 0x446   : > { %1433 = vadd.xlane.f32.xlu1 %v1237_v54 }
 0x448   : > { %v1346_v25 = vpop.xlane.xlu2 %1345 }
 0x449   : > { %v1886_v58 = vperm.slane %v1346_v25, %v3595_v14  ;;  %v1350_v5 = vpop.xlane.xlu1 %1349 }
 0x44a   : > { %v1890_v4 = vperm.slane %v1350_v5, %v3611_v40  ;;  %v3728_v5 = vpop.xlane.xlu0 %1389 }
 0x44b   : > { %v1887_v56 = vsel %vm4144_vm6, %v1886_v58, %v1885_v59  ;;  %v1894_v59 = vperm.slane %v3592_v24, %v3635_v26 }
 0x44c   : > { %v1889_v41 = vsel %vm4143_vm7, %v1888_v53, %v1887_v56  ;;  %vm1091_vm7 = vcmp.eq.s32.totalorder %v3276_v32, %v3060_v48 }
 0x44d   : > { %v1891_v51 = vsel %vm4212_vm9, %v1890_v4, %v1889_v41  ;;  %1435 = vadd.xlane.f32.xlu2 %v1238_v34  ;;  %v1241_v4 = vsel %vm1089_vm3, %v3242_v16, 0.0  ;;  %v1243_v41 = vsel %vm1091_vm7, %v3242_v16, 0.0  ;;  %v4215_v34 = vld [vmem:[#allocation42_spill] sm:$0xff]  ;;  %vm2088_vm3 = vcmask 1041409  }
 0x44e   : > { %1439 = vadd.xlane.f32.xlu1 %v1240_v46  ;;  %vm1092_vm8 = vcmp.eq.s32.totalorder %v4215_v34, %v3060_v48  ;;  %v4219_v34 = vld [vmem:[#allocation44_spill] sm:$0xff] }
 0x450   : > { %v1352_v54 = vpop.xlane.xlu2 %1351 }
 0x451   : > { %v1892_v25 = vperm.slane %v1352_v54, %v3617_v11  ;;  %v1356_v36 = vpop.xlane.xlu1 %1355  ;;  %v4216_v54 = vld [vmem:[#allocation43_spill] sm:$0xff] }
 0x452   : > { %v1896_v58 = vperm.slane %v1356_v36, %v3638_v35  ;;  %vm1094_vm9 = vcmp.eq.s32.totalorder %v4216_v54, %v3060_v48  ;;  %v1244_v36 = vsel %vm1092_vm8, %v3242_v16, 0.0  ;;  %vm1097_vm8 = vcmp.eq.s32.totalorder %v4219_v34, %v3060_v48 }
 0x453   : > { %v1893_v53 = vsel %vm4214_vm14, %v1892_v25, %v1891_v51  ;;  %v1900_v51 = vperm.slane %v3621_v21, %v3659_v27  ;;  %vm4217_vm14 = vcmask 1048512  }
 0x454   : > { %v1895_v29 = vsel %vm1857_vm0, %v1894_v59, %v1893_v53  ;;  %v3745_v59 = vpop.xlane.xlu0 %1395 }
 0x455   : > { %v1897_v56 = vsel %vm1861_vm5, %v1896_v58, %v1895_v29  ;;  %1441 = vadd.xlane.f32.xlu2 %v1241_v4  ;;  %v1246_v58 = vsel %vm1094_vm9, %v3242_v16, 0.0  ;;  %v4218_v29 = vld [vmem:[#allocation20_spill] sm:$0xff]  ;;  %vm1098_vm9 = vcmp.eq.s32.totalorder %v3316_v10, %v3060_v48 }
 0x456   : > { %1445 = vadd.xlane.f32.xlu1 %v1243_v41  ;;  %vm1095_vm7 = vcmp.eq.s32.totalorder %v4218_v29, %v3060_v48 }
 0x457   : > { %v1247_v54 = vsel %vm1095_vm7, %v3242_v16, 0.0  ;;  %v1911_v16 = vperm.slane %v3674_v3, %v3571_v63  ;;  %vm1103_vm7 = vcmp.eq.s32.totalorder %v3324_v38, %v3060_v48 }
 0x458   : > { %v1358_v24 = vpop.xlane.xlu2 %1357 }
 0x459   : > { %v1898_v32 = vperm.slane %v1358_v24, %v3641_v52  ;;  %v1362_v46 = vpop.xlane.xlu1 %1361  ;;  %v1905_v24 = vperm.slane %v3651_v49, %v3550_v61 }
 0x45a   : > { %v1902_v4 = vperm.slane %v1362_v46, %v3060_v48  ;;  %v1249_v46 = vsel %vm1097_vm8, %v3298_v18, 0.0  ;;  %vm4221_vm8 = vcmask 654912  }
 0x45b   : > { %v1899_v45 = vsel %vm1865_vm11, %v1898_v32, %v1897_v56 }
 0x45c   : > { %v1901_v25 = vsel %vm4217_vm14, %v1900_v51, %v1899_v45  ;;  %vm1101_vm14 = vcmp.eq.s32.totalorder %v3320_v28, %v3060_v48  ;;  %v1255_v28 = vsel %vm1103_vm7, %v3298_v18, 0.0  ;;  %vm4225_vm7 = vcmask 786112  }
 0x45d   : > { %1447 = vadd.xlane.f32.xlu2 %v1244_v36  ;;  %v3749_v53 = vsel %vm2088_vm3, %v1901_v25, %v3670_v23  ;;  %v3765_v25 = vpop.xlane.xlu0 %1401 }
 0x45e   : > { %1451 = vadd.xlane.f32.xlu1 %v1246_v58 }
 0x460   : > { %v1364_v21 = vpop.xlane.xlu2 %1363 }
 0x461   : > { %v1903_v56 = vperm.slane %v1364_v21, %v3545_v62  ;;  %v1368_v41 = vpop.xlane.xlu1 %1367  ;;  %v4220_v21 = vld [vmem:[#allocation21_spill] sm:$0xff] }
 0x462   : > { %v1907_v32 = vperm.slane %v1368_v41, %v3568_v55  ;;  %vm1100_vm3 = vcmp.eq.s32.totalorder %v4220_v21, %v3060_v48  ;;  %v1250_v41 = vsel %vm1098_vm9, %v3298_v18, 0.0 }
 0x463   : > { %v1904_v23 = vsel %vm1813_vm10, %v1903_v56, %v1902_v4  ;;  %v1252_v10 = vsel %vm1100_vm3, %v3298_v18, 0.0 }
 0x464   : > { %v1906_v51 = vsel %vm1817_vm12, %v1905_v24, %v1904_v23 }
 0x465   : > { %v1908_v45 = vsel %vm1821_vm13, %v1907_v32, %v1906_v51  ;;  %1453 = vadd.xlane.f32.xlu2 %v1247_v54  ;;  %v3780_v32 = vpop.xlane.xlu0 %1407  ;;  %v1917_v51 = vperm.slane %v3690_v0, %v3595_v14  ;;  %v4222_v0 = vld [vmem:[#allocation45_spill] sm:$0xff] }
 0x466   : > { %1457 = vadd.xlane.f32.xlu1 %v1249_v46  ;;  %vm1104_vm9 = vcmp.eq.s32.totalorder %v4222_v0, %v3060_v48 }
 0x468   : > { %v1370_v49 = vpop.xlane.xlu2 %1369 }
 0x469   : > { %v1909_v36 = vperm.slane %v1370_v49, %v3565_v17  ;;  %v1374_v58 = vpop.xlane.xlu1 %1373  ;;  %v1253_v49 = vsel %vm1101_vm14, %v3298_v18, 0.0  ;;  %vm4224_vm14 = vcmask 720512  }
 0x46a   : > { %v1913_v29 = vperm.slane %v1374_v58, %v3590_v33 }
 0x46b   : > { %v1910_v4 = vsel %vm1825_vm15, %v1909_v36, %v1908_v45 }
 0x46c   : > { %v1912_v56 = vsel %vm1829_vm1, %v1911_v16, %v1910_v4  ;;  %v1923_v16 = vperm.slane %v3707_v60, %v3617_v11 }
 0x46d   : > { %v1914_v24 = vsel %vm1833_vm2, %v1913_v29, %v1912_v56  ;;  %1459 = vadd.xlane.f32.xlu2 %v1250_v41  ;;  %v4223_v29 = vld [vmem:[#allocation46_spill] sm:$0xff]  ;;  %v3803_v56 = vpop.xlane.xlu0 %1413 }
 0x46e   : > { %1463 = vadd.xlane.f32.xlu1 %v1252_v10  ;;  %vm1106_vm3 = vcmp.eq.s32.totalorder %v4223_v29, %v3060_v48  ;;  %v1256_v10 = vsel %vm1104_vm9, %v3298_v18, 0.0  ;;  %vm2090_vm9 = vcmask 1042434   ;;  %v4229_v29 = vld [vmem:[#allocation22_spill] sm:$0xff] }
 0x470   : > { %v1376_v34 = vpop.xlane.xlu2 %1375 }
 0x471   : > { %v1915_v3 = vperm.slane %v1376_v34, %v3587_v57  ;;  %v1380_v23 = vpop.xlane.xlu1 %1379 }
 0x472   : > { %v1919_v54 = vperm.slane %v1380_v23, %v3614_v43  ;;  %v4226_v23 = vld [vmem:[#allocation47_spill] sm:$0xff] }
 0x473   : > { %v1916_v45 = vsel %vm1837_vm4, %v1915_v3, %v1914_v24  ;;  %v1258_v3 = vsel %vm1106_vm3, %v3298_v18, 0.0  ;;  %vm4228_vm3 = vcmask 1048512  }
 0x474   : > { %v1918_v46 = vsel %vm4144_vm6, %v1917_v51, %v1916_v45  ;;  %v1929_v45 = vperm.slane %v3728_v5, %v3641_v52 }
 0x475   : > { %v1920_v36 = vsel %vm4221_vm8, %v1919_v54, %v1918_v46  ;;  %1465 = vadd.xlane.f32.xlu2 %v1253_v49  ;;  %vm1107_vm8 = vcmp.eq.s32.totalorder %v4226_v23, %v3060_v48  ;;  %v4227_v46 = vld [vmem:[#allocation48_spill] sm:$0xff]  ;;  %v3821_v0 = vpop.xlane.xlu0 %1419 }
 0x476   : > { %1469 = vadd.xlane.f32.xlu1 %v1255_v28 }
 0x478   : > { %v1382_v58 = vpop.xlane.xlu2 %1381 }
 0x479   : > { %v1921_v38 = vperm.slane %v1382_v58, %v3611_v40  ;;  %v1386_v21 = vpop.xlane.xlu1 %1385  ;;  %v1259_v58 = vsel %vm1107_vm8, %v3298_v18, 0.0  ;;  %vm1112_vm8 = vcmp.eq.s32.totalorder %v3342_v20, %v3060_v48 }
 0x47a   : > { %v1925_v4 = vperm.slane %v1386_v21, %v3635_v26 }
 0x47b   : > { %v1922_v41 = vsel %vm4224_vm14, %v1921_v38, %v1920_v36  ;;  %vm1109_vm14 = vcmp.eq.s32.totalorder %v4227_v46, %v3060_v48 }
 0x47c   : > { %v1924_v24 = vsel %vm4225_vm7, %v1923_v16, %v1922_v41  ;;  %v1261_v21 = vsel %vm1109_vm14, %v3298_v18, 0.0  ;;  %vm1110_vm7 = vcmp.eq.s32.totalorder %v4229_v29, %v3060_v48  ;;  %vm1113_vm14 = vcmp.eq.s32.totalorder %v3370_v7, %v3060_v48 }
 0x47d   : > { %v1926_v34 = vsel %vm1857_vm0, %v1925_v4, %v1924_v24  ;;  %1471 = vadd.xlane.f32.xlu2 %v1256_v10  ;;  %v1934_v4 = vperm.slane %v3745_v59, %v3545_v62  ;;  %v3840_v23 = vpop.xlane.xlu0 %1425 }
 0x47e   : > { %1475 = vadd.xlane.f32.xlu1 %v1258_v3  ;;  %v1262_v3 = vsel %vm1110_vm7, %v3298_v18, 0.0  ;;  %vm1118_vm7 = vcmp.eq.s32.totalorder %v3378_v8, %v3060_v48 }
 0x480   : > { %v1388_v60 = vpop.xlane.xlu2 %1387 }
 0x481   : > { %v1927_v51 = vperm.slane %v1388_v60, %v3638_v35  ;;  %v1392_v54 = vpop.xlane.xlu1 %1391  ;;  %v1264_v60 = vsel %vm1112_vm8, %v3298_v18, 0.0  ;;  %vm1119_vm8 = vcmp.eq.s32.totalorder %v3398_v47, %v3060_v48 }
 0x482   : > { %v1931_v49 = vperm.slane %v1392_v54, %v3659_v27  ;;  %v4230_v54 = vld [vmem:[#allocation23_spill] sm:$0xff] }
 0x483   : > { %v1928_v36 = vsel %vm1861_vm5, %v1927_v51, %v1926_v34 }
 0x484   : > { %v1930_v28 = vsel %vm1865_vm11, %v1929_v45, %v1928_v36  ;;  %v1940_v45 = vperm.slane %v3765_v25, %v3565_v17  ;;  %v1265_v36 = vsel %vm1113_vm14, %v3349_v42, 0.0  ;;  %vm1121_vm14 = vcmp.eq.s32.totalorder %v3382_v9, %v3060_v48 }
 0x485   : > { %v1932_v38 = vsel %vm4228_vm3, %v1931_v49, %v1930_v28  ;;  %1477 = vadd.xlane.f32.xlu2 %v1259_v58  ;;  %vm1116_vm3 = vcmp.eq.s32.totalorder %v3374_v2, %v3060_v48  ;;  %v1270_v2 = vsel %vm1118_vm7, %v3349_v42, 0.0  ;;  %vm4233_vm7 = vcmask 786112  }
 0x486   : > { %v3826_v5 = vsel %vm2090_vm9, %v1932_v38, %v3749_v53  ;;  %1481 = vadd.xlane.f32.xlu1 %v1261_v21  ;;  %vm1115_vm9 = vcmp.eq.s32.totalorder %v4230_v54, %v3060_v48  ;;  %v3855_v38 = vpop.xlane.xlu0 %1431  ;;  %v1273_v54 = vsel %vm1121_vm14, %v3349_v42, 0.0  ;;  %vm2092_vm14 = vcmask 1043459  }
 0x487   : > { %v1267_v7 = vsel %vm1115_vm9, %v3349_v42, 0.0  ;;  %vm4231_vm9 = vcmask 654912  }
 0x488   : > { %v1394_v16 = vpop.xlane.xlu2 %1393 }
 0x489   : > { %v1933_v41 = vperm.slane %v1394_v16, %v3060_v48  ;;  %v1398_v24 = vpop.xlane.xlu1 %1397  ;;  %v1946_v16 = vperm.slane %v3780_v32, %v3587_v57 }
 0x48a   : > { %v1936_v10 = vperm.slane %v1398_v24, %v3550_v61  ;;  %v1268_v24 = vsel %vm1116_vm3, %v3349_v42, 0.0  ;;  %vm4232_vm3 = vcmask 720512  }
 0x48b   : > { %v1935_v34 = vsel %vm1813_vm10, %v1934_v4, %v1933_v41 }
 0x48c   : > { %v1937_v53 = vsel %vm1817_vm12, %v1936_v10, %v1935_v34 }
 0x48d   : > { %1483 = vadd.xlane.f32.xlu2 %v1262_v3 }
 0x48e   : > { %1487 = vadd.xlane.f32.xlu1 %v1264_v60  ;;  %v3878_v60 = vpop.xlane.xlu0 %1437 }
 0x490   : > { %v1400_v59 = vpop.xlane.xlu2 %1399 }
 0x491   : > { %v1938_v20 = vperm.slane %v1400_v59, %v3568_v55  ;;  %v1404_v51 = vpop.xlane.xlu1 %1403 }
 0x492   : > { %v1942_v46 = vperm.slane %v1404_v51, %v3571_v63  ;;  %v1271_v51 = vsel %vm1119_vm8, %v3349_v42, 0.0  ;;  %vm1129_vm8 = vcmp.eq.s32.totalorder %v3412_v13, %v3060_v48 }
 0x493   : > { %v1939_v18 = vsel %vm1821_vm13, %v1938_v20, %v1937_v53  ;;  %v1952_v53 = vperm.slane %v3803_v56, %v3611_v40  ;;  %v1281_v13 = vsel %vm1129_vm8, %v3391_v22, 0.0 }
 0x494   : > { %v1941_v49 = vsel %vm1825_vm15, %v1940_v45, %v1939_v18 }
 0x495   : > { %v1943_v28 = vsel %vm1829_vm1, %v1942_v46, %v1941_v49  ;;  %1489 = vadd.xlane.f32.xlu2 %v1265_v36  ;;  %v1958_v46 = vperm.slane %v3821_v0, %v3638_v35 }
 0x496   : > { %1493 = vadd.xlane.f32.xlu1 %v1267_v7  ;;  %v3893_v49 = vpop.xlane.xlu0 %1443 }
 0x498   : > { %v1406_v58 = vpop.xlane.xlu2 %1405 }
 0x499   : > { %v1944_v25 = vperm.slane %v1406_v58, %v3590_v33  ;;  %v1410_v21 = vpop.xlane.xlu1 %1409 }
 0x49a   : > { %v1948_v29 = vperm.slane %v1410_v21, %v3595_v14  ;;  %v1964_v21 = vperm.slane %v3840_v23, %v3060_v48 }
 0x49b   : > { %v1945_v4 = vsel %vm1833_vm2, %v1944_v25, %v1943_v28 }
 0x49c   : > { %v1947_v41 = vsel %vm1837_vm4, %v1946_v16, %v1945_v4 }
 0x49d   : > { %v1949_v10 = vsel %vm4144_vm6, %v1948_v29, %v1947_v41  ;;  %1495 = vadd.xlane.f32.xlu2 %v1268_v24  ;;  %vm1122_vm6 = vcmp.eq.s32.totalorder %v3400_v19, %v3060_v48 }
 0x49e   : > { %1499 = vadd.xlane.f32.xlu1 %v1270_v2  ;;  %v1274_v7 = vsel %vm1122_vm6, %v3349_v42, 0.0  ;;  %vm1131_vm6 = vcmp.eq.s32.totalorder %v3416_v1, %v3060_v48  ;;  %v1450_v24 = vpop.xlane.xlu0 %1449 }
 0x4a0   : > { %v1412_v34 = vpop.xlane.xlu2 %1411 }
 0x4a1   : > { %v1950_v8 = vperm.slane %v1412_v34, %v3614_v43  ;;  %v1416_v32 = vpop.xlane.xlu1 %1415 }
 0x4a2   : > { %v1954_v3 = vperm.slane %v1416_v32, %v3617_v11 }
 0x4a3   : > { %v1951_v59 = vsel %vm4231_vm9, %v1950_v8, %v1949_v10  ;;  %vm1124_vm9 = vcmp.eq.s32.totalorder %v3402_v30, %v3060_v48  ;;  %v1283_v10 = vsel %vm1131_vm6, %v3391_v22, 0.0  ;;  %vm1138_vm6 = vcmp.eq.s32.totalorder %v3518_v44, %v3060_v48 }
 0x4a4   : > { %v1953_v20 = vsel %vm4232_vm3, %v1952_v53, %v1951_v59  ;;  %v1276_v58 = vsel %vm1124_vm9, %v3349_v42, 0.0  ;;  %vm4234_vm3 = vcmask 1048512   ;;  %vm1134_vm9 = vcmp.eq.s32.totalorder %v3432_v39, %v3060_v48 }
 0x4a5   : > { %v1955_v47 = vsel %vm4233_vm7, %v1954_v3, %v1953_v20  ;;  %1501 = vadd.xlane.f32.xlu2 %v1271_v51  ;;  %vm1132_vm7 = vcmp.eq.s32.totalorder %v3422_v6, %v3060_v48  ;;  %v1286_v3 = vsel %vm1134_vm9, %v3391_v22, 0.0  ;;  %vm4238_vm9 = vcmask 654912  }
 0x4a6   : > { %1505 = vadd.xlane.f32.xlu1 %v1273_v54  ;;  %v1284_v32 = vsel %vm1132_vm7, %v3391_v22, 0.0  ;;  %v1456_v59 = vpop.xlane.xlu0 %1455  ;;  %vm4237_vm7 = vcmask 589312  }
 0x4a8   : > { %v1418_v56 = vpop.xlane.xlu2 %1417 }
 0x4a9   : > { %v1956_v9 = vperm.slane %v1418_v56, %v3635_v26  ;;  %v1422_v45 = vpop.xlane.xlu1 %1421 }
 0x4aa   : > { %v1960_v18 = vperm.slane %v1422_v45, %v3641_v52 }
 0x4ab   : > { %v1957_v36 = vsel %vm1857_vm0, %v1956_v9, %v1955_v47  ;;  %v1975_v47 = vperm.slane %v3878_v60, %v3590_v33 }
 0x4ac   : > { %v1959_v28 = vsel %vm1861_vm5, %v1958_v46, %v1957_v36 }
 0x4ad   : > { %v1961_v19 = vsel %vm1865_vm11, %v1960_v18, %v1959_v28  ;;  %1507 = vadd.xlane.f32.xlu2 %v1274_v7  ;;  %v4236_v7 = vld [vmem:[#allocation24_spill] sm:$0xff] }
 0x4ae   : > { %1511 = vadd.xlane.f32.xlu1 %v1276_v58  ;;  %v1462_v28 = vpop.xlane.xlu0 %1461 }
 0x4b0   : > { %v1424_v0 = vpop.xlane.xlu2 %1423 }
 0x4b1   : > { %v1962_v30 = vperm.slane %v1424_v0, %v3659_v27  ;;  %v1428_v25 = vpop.xlane.xlu1 %1427 }
 0x4b2   : > { %v1965_v16 = vperm.slane %v1428_v25, %v3545_v62 }
 0x4b3   : > { %v1963_v29 = vsel %vm4234_vm3, %v1962_v30, %v1961_v19  ;;  %vm1125_vm3 = vcmp.eq.s32.totalorder %v4236_v7, %v3060_v48  ;;  %v1981_v19 = vperm.slane %v3893_v49, %v3614_v43  ;;  %v1290_v30 = vsel %vm1138_vm6, %v3391_v22, 0.0 }
 0x4b4   : > { %v3910_v4 = vsel %vm2092_vm14, %v1963_v29, %v3826_v5  ;;  %v1966_v41 = vsel %vm1813_vm10, %v1965_v16, %v1964_v21  ;;  %v1969_v5 = vperm.slane %v3855_v38, %v3568_v55  ;;  %v4235_v38 = vld [vmem:[#allocation29_spill] sm:$0xff]  ;;  %vm1137_vm14 = vcmp.eq.s32.totalorder %v3440_v12, %v3060_v48 }
 0x4b5   : > { %1521 = vadd.xlane.f32.xlu2 %v1281_v13  ;;  %vm1135_vm8 = vcmp.eq.s32.totalorder %v4235_v38, %v3060_v48  ;;  %v1289_v46 = vsel %vm1137_vm14, %v3391_v22, 0.0  ;;  %v1277_v44 = vsel %vm1125_vm3, %v3349_v42, 0.0  ;;  %vm1140_vm14 = vcmp.eq.s32.totalorder %v3450_v50, %v3060_v48 }
 0x4b6   : > { %1525 = vadd.xlane.f32.xlu1 %v1283_v10  ;;  %v1287_v9 = vsel %vm1135_vm8, %v3391_v22, 0.0  ;;  %vm4239_vm8 = vcmask 720512   ;;  %vm1141_vm6 = vcmp.eq.s32.totalorder %v3528_v37, %v3060_v48  ;;  %v1468_v10 = vpop.xlane.xlu0 %1467  ;;  %vm1127_vm3 = vcmp.eq.s32.totalorder %v3404_v15, %v3060_v48 }
 0x4b8   : > { %v1430_v23 = vpop.xlane.xlu2 %1429 }
 0x4b9   : > { %v1967_v1 = vperm.slane %v1430_v23, %v3550_v61  ;;  %v1434_v2 = vpop.xlane.xlu1 %1433 }
 0x4ba   : > { %v1971_v34 = vperm.slane %v1434_v2, %v3565_v17 }
 0x4bb   : > { %v1968_v8 = vsel %vm1817_vm12, %v1967_v1, %v1966_v41  ;;  %v1987_v41 = vperm.slane %v1450_v24, %v3635_v26  ;;  %v1292_v1 = vsel %vm1140_vm14, %v3391_v22, 0.0  ;;  %vm4241_vm14 = vcmask 1048512  }
 0x4bc   : > { %v1970_v53 = vsel %vm1821_vm13, %v1969_v5, %v1968_v8  ;;  %v1293_v5 = vsel %vm1141_vm6, %v3391_v22, 0.0  ;;  %v1993_v8 = vperm.slane %v1456_v59, %v3659_v27  ;;  %v4242_v59 = vld [vmem:[#allocation26_spill] sm:$0xff] }
 0x4bd   : > { %v1972_v6 = vsel %vm1825_vm15, %v1971_v34, %v1970_v53  ;;  %1527 = vadd.xlane.f32.xlu2 %v1284_v32  ;;  %vm1143_vm6 = vcmp.eq.s32.totalorder %v4242_v59, %v3060_v48 }
 0x4be   : > { %1531 = vadd.xlane.f32.xlu1 %v1286_v3  ;;  %v1474_v32 = vpop.xlane.xlu0 %1473 }
 0x4c0   : > { %v1436_v20 = vpop.xlane.xlu2 %1435 }
 0x4c1   : > { %v1973_v39 = vperm.slane %v1436_v20, %v3571_v63  ;;  %v1440_v51 = vpop.xlane.xlu1 %1439 }
 0x4c2   : > { %v1977_v54 = vperm.slane %v1440_v51, %v3587_v57 }
 0x4c3   : > { %v1974_v56 = vsel %vm1829_vm1, %v1973_v39, %v1972_v6  ;;  %v1279_v6 = vsel %vm1127_vm3, %v3349_v42, 0.0  ;;  %vm4244_vm3 = vcmask 654912  }
 0x4c4   : > { %v1976_v45 = vsel %vm1833_vm2, %v1975_v47, %v1974_v56  ;;  %v1998_v47 = vperm.slane %v1462_v28, %v3550_v61 }
 0x4c5   : > { %v1978_v18 = vsel %vm1837_vm4, %v1977_v54, %v1976_v45  ;;  %1533 = vadd.xlane.f32.xlu2 %v1287_v9 }
 0x4c6   : > { %1537 = vadd.xlane.f32.xlu1 %v1289_v46  ;;  %v1480_v9 = vpop.xlane.xlu0 %1479 }
 0x4c8   : > { %v1442_v36 = vpop.xlane.xlu2 %1441 }
 0x4c9   : > { %v1979_v12 = vperm.slane %v1442_v36, %v3595_v14  ;;  %v1446_v60 = vpop.xlane.xlu1 %1445 }
 0x4ca   : > { %v1983_v58 = vperm.slane %v1446_v60, %v3611_v40 }
 0x4cb   : > { %v1980_v0 = vsel %vm4237_vm7, %v1979_v12, %v1978_v18  ;;  %vm4240_vm7 = vcmask 786112   ;;  %v2004_v12 = vperm.slane %v1468_v10, %v3571_v63 }
 0x4cc   : > { %v1982_v25 = vsel %vm4238_vm9, %v1981_v19, %v1980_v0  ;;  %vm1128_vm9 = vcmp.eq.s32.totalorder %v3406_v31, %v3060_v48 }
 0x4cd   : > { %v1984_v21 = vsel %vm4239_vm8, %v1983_v58, %v1982_v25  ;;  %1539 = vadd.xlane.f32.xlu2 %v1290_v30  ;;  %vm2094_vm8 = vcmask 1044484   ;;  %v1280_v20 = vsel %vm1128_vm9, %v3349_v42, 0.0  ;;  %v1295_v42 = vsel %vm1143_vm6, %v3391_v22, 0.0 }
 0x4ce   : > { %1513 = vadd.xlane.f32.xlu1 %v1277_v44  ;;  %v1486_v19 = vpop.xlane.xlu0 %1485  ;;  %v2010_v25 = vperm.slane %v1474_v32, %v3595_v14  ;;  %vm4245_vm9 = vcmask 720512   ;;  %vm4247_vm6 = vcmask 1048512  }
 0x4d0   : > { %v1448_v16 = vpop.xlane.xlu2 %1447 }
 0x4d1   : > { %v1985_v49 = vperm.slane %v1448_v16, %v3617_v11  ;;  %v1452_v29 = vpop.xlane.xlu1 %1451 }
 0x4d2   : > { %v1989_v13 = vperm.slane %v1452_v29, %v3638_v35 }
 0x4d3   : > { %v1986_v23 = vsel %vm4240_vm7, %v1985_v49, %v1984_v21  ;;  %vm4243_vm7 = vcmask 589312  }
 0x4d4   : > { %v1988_v2 = vsel %vm1857_vm0, %v1987_v41, %v1986_v23  ;;  %v2016_v23 = vperm.slane %v1480_v9, %v3617_v11 }
 0x4d5   : > { %v1990_v50 = vsel %vm1861_vm5, %v1989_v13, %v1988_v2  ;;  %1543 = vadd.xlane.f32.xlu2 %v1292_v1 }
 0x4d6   : > { %1545 = vadd.xlane.f32.xlu1 %v1293_v5  ;;  %v1492_v41 = vpop.xlane.xlu0 %1491 }
 0x4d8   : > { %v1454_v34 = vpop.xlane.xlu2 %1453 }
 0x4d9   : > { %v1991_v37 = vperm.slane %v1454_v34, %v3641_v52  ;;  %v1458_v24 = vpop.xlane.xlu1 %1457 }
 0x4da   : > { %v1995_v31 = vperm.slane %v1458_v24, %v3060_v48 }
 0x4db   : > { %v1992_v53 = vsel %vm1865_vm11, %v1991_v37, %v1990_v50 }
 0x4dc   : > { %v1994_v3 = vsel %vm4241_vm14, %v1993_v8, %v1992_v53  ;;  %v2022_v8 = vperm.slane %v1486_v19, %v3641_v52  ;;  %vm2096_vm14 = vcmask 1045509  }
 0x4dd   : > { %1517 = vadd.xlane.f32.xlu2 %v1279_v6  ;;  %v2095_v15 = vsel %vm2094_vm8, %v1994_v3, %v3910_v4  ;;  %vm4246_vm8 = vcmask 786112  }
 0x4de   : > { %1519 = vadd.xlane.f32.xlu1 %v1280_v20  ;;  %v1498_v53 = vpop.xlane.xlu0 %1497 }
 0x4e0   : > { %v1460_v38 = vpop.xlane.xlu2 %1459 }
 0x4e1   : > { %v1996_v39 = vperm.slane %v1460_v38, %v3545_v62  ;;  %v1464_v51 = vpop.xlane.xlu1 %1463 }
 0x4e2   : > { %v2000_v54 = vperm.slane %v1464_v51, %v3568_v55 }
 0x4e3   : > { %v1997_v56 = vsel %vm1813_vm10, %v1996_v39, %v1995_v31  ;;  %v2027_v31 = vperm.slane %v1492_v41, %v3545_v62 }
 0x4e4   : > { %v1999_v4 = vsel %vm1817_vm12, %v1998_v47, %v1997_v56 }
 0x4e5   : > { %v2001_v45 = vsel %vm1821_vm13, %v2000_v54, %v1999_v4  ;;  %1549 = vadd.xlane.f32.xlu2 %v1295_v42 }
 0x4e6   : > { %v1504_v47 = vpop.xlane.xlu0 %1503 }
 0x4e8   : > { %v1466_v46 = vpop.xlane.xlu2 %1465 }
 0x4e9   : > { %v2002_v18 = vperm.slane %v1466_v46, %v3565_v17  ;;  %v1470_v36 = vpop.xlane.xlu1 %1469 }
 0x4ea   : > { %v2006_v28 = vperm.slane %v1470_v36, %v3590_v33 }
 0x4eb   : > { %v2003_v60 = vsel %vm1825_vm15, %v2002_v18, %v2001_v45 }
 0x4ec   : > { %v2005_v7 = vsel %vm1829_vm1, %v2004_v12, %v2003_v60 }
 0x4ed   : > { %v2007_v22 = vsel %vm1833_vm2, %v2006_v28, %v2005_v7 }
 0x4ee   : > { %v1510_v4 = vpop.xlane.xlu0 %1509 }
 0x4f0   : > { %v1472_v58 = vpop.xlane.xlu2 %1471 }
 0x4f1   : > { %v2008_v0 = vperm.slane %v1472_v58, %v3587_v57  ;;  %v1476_v30 = vpop.xlane.xlu1 %1475 }
 0x4f2   : > { %v2012_v21 = vperm.slane %v1476_v30, %v3614_v43 }
 0x4f3   : > { %v2009_v44 = vsel %vm1837_vm4, %v2008_v0, %v2007_v22 }
 0x4f4   : > { %v2011_v16 = vsel %vm4243_vm7, %v2010_v25, %v2009_v44 }
 0x4f5   : > { %v2013_v49 = vsel %vm4244_vm3, %v2012_v21, %v2011_v16 }
 0x4f6   : > { %v1524_v46 = vpop.xlane.xlu0 %1523 }
 0x4f8   : > { %v1478_v29 = vpop.xlane.xlu2 %1477 }
 0x4f9   : > { %v2014_v13 = vperm.slane %v1478_v29, %v3611_v40  ;;  %v1482_v10 = vpop.xlane.xlu1 %1481  ;;  %v2058_v29 = vperm.slane %v1524_v46, %v3545_v62 }
 0x4fa   : > { %v2018_v1 = vperm.slane %v1482_v10, %v3635_v26 }
 0x4fb   : > { %v2015_v2 = vsel %vm4245_vm9, %v2014_v13, %v2013_v49  ;;  %v2033_v49 = vperm.slane %v1498_v53, %v3565_v17 }
 0x4fc   : > { %v2017_v5 = vsel %vm4246_vm8, %v2016_v23, %v2015_v2 }
 0x4fd   : > { %v2019_v50 = vsel %vm1857_vm0, %v2018_v1, %v2017_v5 }
 0x4fe   : > { %v1530_v12 = vpop.xlane.xlu0 %1529 }
 0x500   : > { %v1484_v34 = vpop.xlane.xlu2 %1483 }
 0x501   : > { %v2020_v37 = vperm.slane %v1484_v34, %v3638_v35  ;;  %v1488_v24 = vpop.xlane.xlu1 %1487 }
 0x502   : > { %v2024_v32 = vperm.slane %v1488_v24, %v3659_v27 }
 0x503   : > { %v2021_v3 = vsel %vm1861_vm5, %v2020_v37, %v2019_v50  ;;  %v2039_v37 = vperm.slane %v1504_v47, %v3587_v57 }
 0x504   : > { %v2023_v6 = vsel %vm1865_vm11, %v2022_v8, %v2021_v3  ;;  %v2064_v8 = vperm.slane %v1530_v12, %v3565_v17 }
 0x505   : > { %v2025_v20 = vsel %vm4247_vm6, %v2024_v32, %v2023_v6 }
 0x506   : > { %v4011_v38 = vsel %vm2096_vm14, %v2025_v20, %v2095_v15  ;;  %v1536_v60 = vpop.xlane.xlu0 %1535 }
 0x508   : > { %v1490_v59 = vpop.xlane.xlu2 %1489 }
 0x509   : > { %v2026_v39 = vperm.slane %v1490_v59, %v3060_v48  ;;  %v1494_v51 = vpop.xlane.xlu1 %1493 }
 0x50a   : > { %v2029_v19 = vperm.slane %v1494_v51, %v3550_v61  ;;  %v2045_v51 = vperm.slane %v1510_v4, %v3611_v40 }
 0x50b   : > { %v2028_v54 = vsel %vm1813_vm10, %v2027_v31, %v2026_v39 }
 0x50c   : > { %v2030_v25 = vsel %vm1817_vm12, %v2029_v19, %v2028_v54 }
 0x50e   : > { %v1542_v30 = vpop.xlane.xlu0 %1541 }
 0x510   : > { %v1496_v56 = vpop.xlane.xlu2 %1495 }
 0x511   : > { %v1500_v42 = vpop.xlane.xlu1 %1499  ;;  %v2031_v58 = vperm.slane %v1496_v56, %v3568_v55  ;;  %v2070_v56 = vperm.slane %v1536_v60, %v3587_v57  ;;  %v2076_v60 = vperm.slane %v1542_v30, %v3611_v40 }
 0x512   : > { %v2035_v41 = vperm.slane %v1500_v42, %v3571_v63 }
 0x513   : > { %v2032_v44 = vsel %vm1821_vm13, %v2031_v58, %v2030_v25 }
 0x514   : > { %v2034_v13 = vsel %vm1825_vm15, %v2033_v49, %v2032_v44 }
 0x515   : > { %v2036_v5 = vsel %vm1829_vm1, %v2035_v41, %v2034_v13 }
 0x516   : > { %v1516_v32 = vpop.xlane.xlu0 %1515 }
 0x518   : > { %v1502_v9 = vpop.xlane.xlu2 %1501 }
 0x519   : > { %v1506_v45 = vpop.xlane.xlu1 %1505  ;;  %v2037_v10 = vperm.slane %v1502_v9, %v3590_v33 }
 0x520   : > { %v1508_v18 = vpop.xlane.xlu2 %1507 }
 0x521   : > { %v1512_v36 = vpop.xlane.xlu1 %1511 }
 0x528   : > { %v1522_v15 = vpop.xlane.xlu2 %1521 }
 0x529   : > { %v1526_v28 = vpop.xlane.xlu1 %1525  ;;  %v2057_v16 = vperm.slane %v1522_v15, %v3060_v48  ;;  %v2038_v48 = vsel %vm1833_vm2, %v2037_v10, %v2036_v5 }
 0x52a   : > { %v2060_v23 = vperm.slane %v1526_v28, %v3550_v61  ;;  %v2041_v61 = vperm.slane %v1506_v45, %v3595_v14  ;;  %v2040_v53 = vsel %vm1837_vm4, %v2039_v37, %v2038_v48 }
 0x52b   : > { %v2059_v1 = vsel %vm1813_vm10, %v2058_v29, %v2057_v16  ;;  %vm4248_vm10 = vmmov %vm4243_vm7 }
 0x52c   : > { %v2061_v34 = vsel %vm1817_vm12, %v2060_v23, %v2059_v1  ;;  %v2042_v59 = vsel %vm4248_vm10, %v2041_v61, %v2040_v53  ;;  %vm4249_vm12 = vmmov %vm4244_vm3 }
 0x530   : > { %v1528_v7 = vpop.xlane.xlu2 %1527 }
 0x531   : > { %v1532_v22 = vpop.xlane.xlu1 %1531  ;;  %v2062_v2 = vperm.slane %v1528_v7, %v3568_v55  ;;  %v2043_v55 = vperm.slane %v1508_v18, %v3614_v43  ;;  %v1548_v18 = vpop.xlane.xlu0 %1547 }
 0x532   : > { %v2066_v3 = vperm.slane %v1532_v22, %v3571_v63  ;;  %v2047_v63 = vperm.slane %v1512_v36, %v3617_v11  ;;  %v2051_v36 = vperm.slane %v1516_v32, %v3638_v35  ;;  %v2082_v16 = vperm.slane %v1548_v18, %v3638_v35 }
 0x533   : > { %v2063_v24 = vsel %vm1821_vm13, %v2062_v2, %v2061_v34  ;;  %v2044_v31 = vsel %vm4249_vm12, %v2043_v55, %v2042_v59  ;;  %vm4250_vm13 = vmmov %vm4245_vm9 }
 0x534   : > { %v2065_v6 = vsel %vm1825_vm15, %v2064_v8, %v2063_v24  ;;  %v2046_v42 = vsel %vm4250_vm13, %v2045_v51, %v2044_v31  ;;  %vm4251_vm15 = vmmov %vm4246_vm8 }
 0x535   : > { %v2067_v17 = vsel %vm1829_vm1, %v2066_v3, %v2065_v6  ;;  %v2048_v4 = vsel %vm4251_vm15, %v2047_v63, %v2046_v42  ;;  %vm4252_vm1 = vmmov %vm4243_vm7 }
 0x536   : > { %vm4254_vm7 = vmmov %vm4245_vm9 }
 0x537   : > { %vm4256_vm9 = vmmov %vm4247_vm6 }
 0x538   : > { %v1534_v0 = vpop.xlane.xlu2 %1533 }
 0x539   : > { %v1538_v21 = vpop.xlane.xlu1 %1537  ;;  %v2068_v20 = vperm.slane %v1534_v0, %v3590_v33 }
 0x53a   : > { %v2072_v33 = vperm.slane %v1538_v21, %v3595_v14  ;;  %v1552_v21 = vpop.xlane.xlu0 %1551 }
 0x53b   : > { %v2069_v47 = vsel %vm1833_vm2, %v2068_v20, %v2067_v17  ;;  %vm4253_vm2 = vmmov %vm4244_vm3  ;;  %v2086_v29 = vperm.slane %v1552_v21, %v3659_v27 }
 0x53c   : > { %v2071_v45 = vsel %vm1837_vm4, %v2070_v56, %v2069_v47  ;;  %vm2098_vm4 = vcmask 1046534   ;;  %vm4255_vm3 = vmmov %vm4246_vm8  ;;  %vm2100_vm8 = vcmask 1047559  }
 0x53d   : > { %v2073_v12 = vsel %vm4252_vm1, %v2072_v33, %v2071_v45 }
 0x540   : > { %v1540_v50 = vpop.xlane.xlu2 %1539 }
 0x541   : > { %v1514_v62 = vpop.xlane.xlu1 %1513  ;;  %v2074_v46 = vperm.slane %v1540_v50, %v3614_v43 }
 0x542   : > { %v2049_v9 = vperm.slane %v1514_v62, %v3635_v26 }
 0x543   : > { %v2075_v15 = vsel %vm4253_vm2, %v2074_v46, %v2073_v12 }
 0x544   : > { %v2050_v57 = vsel %vm1857_vm0, %v2049_v9, %v2048_v4  ;;  %v2077_v58 = vsel %vm4254_vm7, %v2076_v60, %v2075_v15 }
 0x545   : > { %v2052_v22 = vsel %vm1861_vm5, %v2051_v36, %v2050_v57 }
 0x548   : > { %v1544_v39 = vpop.xlane.xlu2 %1543 }
 0x549   : > { %v1546_v54 = vpop.xlane.xlu1 %1545  ;;  %v2078_v14 = vperm.slane %v1544_v39, %v3617_v11 }
 0x54a   : > { %v2080_v0 = vperm.slane %v1546_v54, %v3635_v26 }
 0x54b   : > { %v2079_v11 = vsel %vm4255_vm3, %v2078_v14, %v2077_v58 }
 0x54c   : > { %v2081_v44 = vsel %vm1857_vm0, %v2080_v0, %v2079_v11  ;;  %vm4258_vm0 = vmmov %vm4247_vm6 }
 0x550   : > { %v1518_v28 = vpop.xlane.xlu2 %1517 }
 0x551   : > { %v2053_v43 = vperm.slane %v1518_v28, %v3641_v52  ;;  %v1520_v7 = vpop.xlane.xlu1 %1519 }
 0x552   : > { %v2055_v19 = vperm.slane %v1520_v7, %v3659_v27 }
 0x553   : > { %v2054_v25 = vsel %vm1865_vm11, %v2053_v43, %v2052_v22 }
 0x554   : > { %v2056_v40 = vsel %vm4256_vm9, %v2055_v19, %v2054_v25 }
 0x555   : > { %v2099_v30 = vsel %vm2098_vm4, %v2056_v40, %v4011_v38  ;;  %v2083_v38 = vsel %vm1861_vm5, %v2082_v16, %v2081_v44 }
 0x558   : > { %v1550_v49 = vpop.xlane.xlu2 %1549 }
 0x559   : > { %v2084_v26 = vperm.slane %v1550_v49, %v3641_v52 }
 0x55b   : > { %v2085_v41 = vsel %vm1865_vm11, %v2084_v26, %v2083_v38 }
 0x55c   : > { %v2087_v35 = vsel %vm4258_vm0, %v2086_v29, %v2085_v41 }
 0x55d   : > { %v2101_v13 = vsel %vm2100_vm8, %v2087_v35, %v2099_v30 }
 0x55e   : > { %2104 = vst [vmem:[%s227_s5] sm:$0xff] %v2101_v13 }
 0x55f   : > { %2567 = shalt.err (!%p2564_p4)
}
 0x560   : > { %2257 = dma.vmem_to_hbm [thread:$0]  (%p2799_p1), %s2121_s7, 128, %s2123_s24, %s2106_s22  }
 0x561 PF: > { %s4259_s12 = sld [smem:[#allocation11_spill]]  ;;  %p2271_p7 = scmp.ge.s32.totalorder %s2666_s19, 2 }
 0x563   : > { %p2267_p8 = pnand %p2271_p7, %p2803_p9 }
 0x565   : > { %p2268_p3 = pneg %p2267_p8 }
 0x567   : > { %s2134_s23 = sand.u32 1, %s4259_s12  }
 0x568   : > { %s2135_s16 = scalar_lea.sflag [#allocation4], %s2134_s23 }
 0x569   : > { %2621 = dma.done.wait (%p2268_p3), %s2135_s16, 128  }
 0x56a   : > { %2623 = vsyncadd (%p2268_p3), %s2135_s16, 4294967168  ;;  %s21_s19 = sadd.s32 1, %s2666_s19   ;;  %s4261_s27 = sld [smem:[#allocation12_spill]] }
 0x56b   : > { %p18_p11 = scmp.ge.s32.totalorder %s21_s19, 11   ;;  %s4262_s29 = sld [smem:[#allocation13_spill]] }
 0x56c   : > { %s4263_s9 = smov %s2630_s10  ;;  %s4264_s10 = smov %s2634_s11 }
 0x56d   : > { %s4265_s11 = smov %s2816_s20  ;;  %s4266_s12 = smov %s2642_s13 }
 0x56e   : > { %s4267_s13 = smov %s2646_s14  ;;  %s4268_s14 = smov %s2813_s4 }
 0x56f   : > { %s4269_s15 = smov %s2658_s17  ;;  %s4270_s16 = smov %s2662_s18 }
 0x570   : > { %s4271_s17 = smov %s4261_s27  ;;  %20 = sbr.rel (!%p18_p11) target bundleno = 13 (0xd), region = 90 }
 0x571   : > { %s4272_s18 = smov %s4262_s29 }
 0x575   :  { %2141 = vsyncpa [#allocation3], 1 }
 0x576   :  { %2143 = vsyncpa [#allocation3 + $0x1], 1 }
 0x577   :  { %2144 = vsyncpa [#allocation6], 1 }
 0x578   :  { %2146 = vsyncpa [#allocation6 + $0x1], 1 }
 0x579   :  { %2147 = vsyncpa [#allocation4], 1 }
 0x57a   :  { %2149 = vsyncpa [#allocation4 + $0x1], 1 }

</bundles_post_ra>
